<compile_context>
chip_gen: v7x
topology: tpu7x:2x2x1
jax: 0.10.0
libtpu: 0.0.40
codegen_flags: <defaults>
</compile_context>

<pallas_src>
import jax
import jax.numpy as jnp
from jax.experimental import pallas as pl
from jax.experimental.pallas import tpu as pltpu

LANES = 128  # lane-dense padded width for every kernel output


# ---------------------------------------------------------------------------
# Pallas kernels
# ---------------------------------------------------------------------------
def _conv_pool_kernel(p_ref, w_ref, b_ref, o_ref):
    """Fused conv (im2col matmul) + bias + ReLU + 2x2 max-pool.

    p_ref : (4, 1, Mp, K)  im2col patches; axis 0 = the 4 pixels of each
                           2x2 pool window, axis 1 = batch block of 1.
    w_ref : (K, 128)       flattened conv weight, output channels padded.
    b_ref : (1, 128)       bias, padded with zeros.
    o_ref : (1, Mp, 128)   pooled output (channels-last, lane-dense).
    """
    w = w_ref[...]
    m = jnp.dot(p_ref[0, 0], w, preferred_element_type=jnp.float32)
    for q in range(1, 4):  # static unroll: 4 MXU dots + VPU max == 2x2 pool
        m = jnp.maximum(m, jnp.dot(p_ref[q, 0], w,
                                   preferred_element_type=jnp.float32))
    # max commutes with the monotone (bias + ReLU) epilogue.
    o_ref[0, :, :] = jnp.maximum(m + b_ref[...], 0.0).astype(o_ref.dtype)


def _fc_head_kernel(x_ref, w1_ref, b1_ref, w2_ref, b2_ref, w3_ref, b3_ref,
                    o_ref):
    """fc1+ReLU -> fc2+ReLU -> fc3, fully fused (weights resident in VMEM)."""
    h = jnp.dot(x_ref[...], w1_ref[...], preferred_element_type=jnp.float32)
    h = jnp.maximum(h + b1_ref[...], 0.0)
    h = jnp.dot(h, w2_ref[...], preferred_element_type=jnp.float32)
    h = jnp.maximum(h + b2_ref[...], 0.0)
    h = jnp.dot(h, w3_ref[...], preferred_element_type=jnp.float32)
    o_ref[...] = (h + b3_ref[...]).astype(o_ref.dtype)


# ---------------------------------------------------------------------------
# Wrappers around pallas_call
# ---------------------------------------------------------------------------
def conv_relu_pool(x_nhwc, w_flat, b_pad, k):
    """x_nhwc: [B,H,W,C]; w_flat: [k*k*C, 128]; b_pad: [1, 128].

    Returns pooled activations [B, Hp*Wp, 128] (channels in the first
    C_out lanes, rest zero)."""
    B, H, W, C = x_nhwc.shape
    Ho, Wo = H - k + 1, W - k + 1
    Hp, Wp = Ho // 2, Wo // 2
    K = k * k * C
    N = w_flat.shape[1]

    # im2col (XLA glue, channels-last): feature order (i, j, c) matches the
    # weight flatten done in prepare_params.
    cols = [x_nhwc[:, i:i + Ho, j:j + Wo, :] for i in range(k) for j in range(k)]
    P = jnp.concatenate(cols, axis=-1)                       # [B, Ho, Wo, K]
    # Group the 4 conv-output pixels of each 2x2 pool window on a leading axis.
    P4 = jnp.stack([P[:, 0::2, 0::2], P[:, 0::2, 1::2],
                    P[:, 1::2, 0::2], P[:, 1::2, 1::2]], axis=0)
    P4 = P4.reshape(4, B, Hp * Wp, K).astype(jnp.float32)    # [4, B, Mp, K]

    return pl.pallas_call(
        _conv_pool_kernel,
        grid=(B,),
        out_shape=jax.ShapeDtypeStruct((B, Hp * Wp, N), jnp.float32),
        in_specs=[
            pl.BlockSpec((4, 1, Hp * Wp, K), lambda b: (0, b, 0, 0)),
            pl.BlockSpec((K, N), lambda b: (0, 0)),
            pl.BlockSpec((1, N), lambda b: (0, 0)),
        ],
        out_specs=pl.BlockSpec((1, Hp * Wp, N), lambda b: (b, 0, 0)),
        compiler_params=pltpu.CompilerParams(
            dimension_semantics=("parallel",)),
    )(P4, w_flat, b_pad)


def fc_head(x, params):
    """x: [B, 400] -> [B, 128] (first 2 lanes valid)."""
    B, K = x.shape
    N = LANES
    return pl.pallas_call(
        _fc_head_kernel,
        grid=(1,),
        out_shape=jax.ShapeDtypeStruct((B, N), jnp.float32),
        in_specs=[
            pl.BlockSpec((B, K), lambda i: (0, 0)),
            pl.BlockSpec((K, N), lambda i: (0, 0)),
            pl.BlockSpec((1, N), lambda i: (0, 0)),
            pl.BlockSpec((N, N), lambda i: (0, 0)),
            pl.BlockSpec((1, N), lambda i: (0, 0)),
            pl.BlockSpec((N, N), lambda i: (0, 0)),
            pl.BlockSpec((1, N), lambda i: (0, 0)),
        ],
        out_specs=pl.BlockSpec((B, N), lambda i: (0, 0)),
        compiler_params=pltpu.CompilerParams(
            dimension_semantics=("arbitrary",)),
    )(x.astype(jnp.float32), params["fc1_w"], params["fc1_b"],
      params["fc2_w"], params["fc2_b"], params["fc3_w"], params["fc3_b"])


# ---------------------------------------------------------------------------
# Parameters: PyTorch-layout synthetic init + one-time kernel-layout prep
# ---------------------------------------------------------------------------
def init_params(key):
    """Synthetic params in PyTorch layout, shapes matching Classify.__init__."""
    def uniform(key, shape, fan_in):
        bound = 1.0 / jnp.sqrt(jnp.float32(fan_in))
        return jax.random.uniform(key, shape, jnp.float32, -bound, bound)

    ks = jax.random.split(key, 10)
    return {
        "conv1_w": uniform(ks[0], (6, 3, 5, 5), 3 * 5 * 5),
        "conv1_b": uniform(ks[1], (6,), 3 * 5 * 5),
        "conv2_w": uniform(ks[2], (16, 6, 5, 5), 6 * 5 * 5),
        "conv2_b": uniform(ks[3], (16,), 6 * 5 * 5),
        "fc1_w": uniform(ks[4], (120, 16 * 5 * 5), 16 * 5 * 5),
        "fc1_b": uniform(ks[5], (120,), 16 * 5 * 5),
        "fc2_w": uniform(ks[6], (60, 120), 120),
        "fc2_b": uniform(ks[7], (60,), 120),
        "fc3_w": uniform(ks[8], (2, 60), 60),
        "fc3_b": uniform(ks[9], (2,), 60),
    }


def _pad_cols(a, n):
    return jnp.pad(a, ((0, 0), (0, n - a.shape[1])))


def _pad_rows(a, n):
    return jnp.pad(a, ((0, n - a.shape[0]), (0, 0)))


def prepare_params(p):
    """One-time weight prep: flatten/transpose/permute + zero-pad to 128 lanes."""
    k = 5
    out = {}
    for wname, bname in (("conv1_w", "conv1_b"), ("conv2_w", "conv2_b")):
        w = p[wname]                                   # [Cout, Cin, k, k]
        cout, cin = w.shape[0], w.shape[1]
        wf = jnp.transpose(w, (2, 3, 1, 0)).reshape(k * k * cin, cout)
        out[wname] = _pad_cols(wf, LANES)              # [k*k*Cin, 128]
        out[bname] = _pad_cols(p[bname].reshape(1, cout), LANES)
    # fc1: PyTorch input index is (c, h, w); our flatten is (h, w, c).
    w1 = p["fc1_w"].reshape(120, 16, 5, 5).transpose(2, 3, 1, 0).reshape(400, 120)
    out["fc1_w"] = _pad_cols(w1, LANES)                                # [400,128]
    out["fc1_b"] = _pad_cols(p["fc1_b"].reshape(1, 120), LANES)
    out["fc2_w"] = _pad_cols(_pad_rows(p["fc2_w"].T, LANES), LANES)    # [128,128]
    out["fc2_b"] = _pad_cols(p["fc2_b"].reshape(1, 60), LANES)
    out["fc3_w"] = _pad_cols(_pad_rows(p["fc3_w"].T, LANES), LANES)    # [128,128]
    out["fc3_b"] = _pad_cols(p["fc3_b"].reshape(1, 2), LANES)
    return out


# ---------------------------------------------------------------------------
# Forward pass
# ---------------------------------------------------------------------------
def classify_forward(params, x):
    """Forward pass of Classify.  x: [B, 3, 32, 32] (NCHW) -> [B, 2]."""
    B = x.shape[0]
    x = jnp.transpose(x, (0, 2, 3, 1)).astype(jnp.float32)   # NCHW -> NHWC once
    y = conv_relu_pool(x, params["conv1_w"], params["conv1_b"], 5)  # [B,196,128]
    y = y[:, :, :6].reshape(B, 14, 14, 6)
    y = conv_relu_pool(y, params["conv2_w"], params["conv2_b"], 5)  # [B,25,128]
    y = y[:, :, :16].reshape(B, 400)          # (h, w, c) flatten; fc1 pre-permuted
    out = fc_head(y, params)                                         # [B,128]
    return out[:, :2]


# ---------------------------------------------------------------------------
# Pure-JAX reference (PyTorch semantics) for a correctness check
# ---------------------------------------------------------------------------
def reference_forward(raw, x):
    def conv_block(y, w, b):
        y = jax.lax.conv_general_dilated(
            y, w, (1, 1), "VALID",
            dimension_numbers=("NCHW", "OIHW", "NCHW"))
        y = jax.nn.relu(y + b.reshape(1, -1, 1, 1))
        return jax.lax.reduce_window(y, -jnp.inf, jax.lax.max,
                                     (1, 1, 2, 2), (1, 1, 2, 2), "VALID")
    y = conv_block(x, raw["conv1_w"], raw["conv1_b"])
    y = conv_block(y, raw["conv2_w"], raw["conv2_b"])
    y = y.reshape(y.shape[0], -1)                      # NCHW flatten (c, h, w)
    y = jax.nn.relu(y @ raw["fc1_w"].T + raw["fc1_b"])
    y = jax.nn.relu(y @ raw["fc2_w"].T + raw["fc2_b"])
    return y @ raw["fc3_w"].T + raw["fc3_b"]


if __name__ == "__main__":
    key = jax.random.PRNGKey(0)
    pkey, xkey = jax.random.split(key)
    raw_params = init_params(pkey)
    params = prepare_params(raw_params)
    # Input must be 32x32 so the flatten matches 16*5*5 = 400 features.
    x = jax.random.normal(xkey, (2, 3, 32, 32), dtype=jnp.float32)

    fwd = jax.jit(classify_forward)
    out = jax.block_until_ready(fwd(params, x))
    assert out.shape == (2, 2), out.shape

    ref = jax.block_until_ready(reference_forward(raw_params, x))
    assert jnp.allclose(out, ref, atol=3e-2, rtol=3e-2), (
        "mismatch vs reference", out, ref)

    print("KERNEL_OK")
</pallas_src>

<mosaic_0001>
module attributes {stable_mosaic.version = 11 : i64} {
  func.func @_conv_pool_kernel(%arg0: i32, %arg1: memref<4x1x196x75xf32, #tpu.memory_space<vmem>>, %arg2: memref<75x128xf32, #tpu.memory_space<vmem>>, %arg3: memref<1x128xf32, #tpu.memory_space<vmem>>, %arg4: memref<1x196x128xf32, #tpu.memory_space<vmem>>) attributes {dimension_semantics = [#tpu.dimension_semantics<parallel>], iteration_bounds = array<i64: 2>, scalar_prefetch = 0 : i64, scratch_operands = 0 : i64, tpu.core_type = #tpu.core_type<tc>, window_params = [{transform_indices = @transform_0, window_bounds = array<i64: 4, 1, 196, 75>}, {pipeline_mode = #tpu.pipeline_mode<synchronous>, transform_indices = @transform_1, window_bounds = array<i64: 75, 128>}, {pipeline_mode = #tpu.pipeline_mode<synchronous>, transform_indices = @transform_2, window_bounds = array<i64: 1, 128>}, {transform_indices = @transform_3, window_bounds = array<i64: 1, 196, 128>}]} {
    %c0 = arith.constant 0 : index
    %c0_0 = arith.constant 0 : index
    %0 = vector.load %arg2[%c0, %c0_0] : memref<75x128xf32, #tpu.memory_space<vmem>>, vector<75x128xf32>
    %c0_1 = arith.constant 0 : index
    %c0_2 = arith.constant 0 : index
    %c0_3 = arith.constant 0 : index
    %c0_4 = arith.constant 0 : index
    %1 = vector.load %arg1[%c0_1, %c0_2, %c0_3, %c0_4] : memref<4x1x196x75xf32, #tpu.memory_space<vmem>>, vector<1x1x196x75xf32>
    %2 = vector.shape_cast %1 : vector<1x1x196x75xf32> to vector<196x75xf32>
    %cst = arith.constant dense<0.000000e+00> : vector<196x128xf32>
    %3 = tpu.matmul %2, %0, %cst {dimension_numbers = #tpu.dot_dimension_numbers<[1], [0], [0], [1], [0, 0, 1, 1], [], []>} : vector<196x75xf32>, vector<75x128xf32>, vector<196x128xf32> -> vector<196x128xf32>
    %c1 = arith.constant 1 : index
    %c0_5 = arith.constant 0 : index
    %c0_6 = arith.constant 0 : index
    %c0_7 = arith.constant 0 : index
    %4 = vector.load %arg1[%c1, %c0_5, %c0_6, %c0_7] : memref<4x1x196x75xf32, #tpu.memory_space<vmem>>, vector<1x1x196x75xf32>
    %5 = vector.shape_cast %4 : vector<1x1x196x75xf32> to vector<196x75xf32>
    %cst_8 = arith.constant dense<0.000000e+00> : vector<196x128xf32>
    %6 = tpu.matmul %5, %0, %cst_8 {dimension_numbers = #tpu.dot_dimension_numbers<[1], [0], [0], [1], [0, 0, 1, 1], [], []>} : vector<196x75xf32>, vector<75x128xf32>, vector<196x128xf32> -> vector<196x128xf32>
    %7 = arith.maximumf %3, %6 : vector<196x128xf32>
    %c2 = arith.constant 2 : index
    %c0_9 = arith.constant 0 : index
    %c0_10 = arith.constant 0 : index
    %c0_11 = arith.constant 0 : index
    %8 = vector.load %arg1[%c2, %c0_9, %c0_10, %c0_11] : memref<4x1x196x75xf32, #tpu.memory_space<vmem>>, vector<1x1x196x75xf32>
    %9 = vector.shape_cast %8 : vector<1x1x196x75xf32> to vector<196x75xf32>
    %cst_12 = arith.constant dense<0.000000e+00> : vector<196x128xf32>
    %10 = tpu.matmul %9, %0, %cst_12 {dimension_numbers = #tpu.dot_dimension_numbers<[1], [0], [0], [1], [0, 0, 1, 1], [], []>} : vector<196x75xf32>, vector<75x128xf32>, vector<196x128xf32> -> vector<196x128xf32>
    %11 = arith.maximumf %7, %10 : vector<196x128xf32>
    %c3 = arith.constant 3 : index
    %c0_13 = arith.constant 0 : index
    %c0_14 = arith.constant 0 : index
    %c0_15 = arith.constant 0 : index
    %12 = vector.load %arg1[%c3, %c0_13, %c0_14, %c0_15] : memref<4x1x196x75xf32, #tpu.memory_space<vmem>>, vector<1x1x196x75xf32>
    %13 = vector.shape_cast %12 : vector<1x1x196x75xf32> to vector<196x75xf32>
    %cst_16 = arith.constant dense<0.000000e+00> : vector<196x128xf32>
    %14 = tpu.matmul %13, %0, %cst_16 {dimension_numbers = #tpu.dot_dimension_numbers<[1], [0], [0], [1], [0, 0, 1, 1], [], []>} : vector<196x75xf32>, vector<75x128xf32>, vector<196x128xf32> -> vector<196x128xf32>
    %15 = arith.maximumf %11, %14 : vector<196x128xf32>
    %c0_17 = arith.constant 0 : index
    %c0_18 = arith.constant 0 : index
    %16 = vector.load %arg3[%c0_17, %c0_18] : memref<1x128xf32, #tpu.memory_space<vmem>>, vector<1x128xf32>
    %17 = vector.broadcast %16 : vector<1x128xf32> to vector<196x128xf32>
    %18 = arith.addf %15, %17 : vector<196x128xf32>
    %cst_19 = arith.constant 0.000000e+00 : f32
    %19 = vector.broadcast %cst_19 : f32 to vector<196x128xf32>
    %20 = arith.maximumf %18, %19 : vector<196x128xf32>
    %c0_20 = arith.constant 0 : index
    %c0_21 = arith.constant 0 : index
    %c0_22 = arith.constant 0 : index
    %21 = vector.load %arg4[%c0_20, %c0_21, %c0_22] : memref<1x196x128xf32, #tpu.memory_space<vmem>>, vector<1x196x128xf32>
    %22 = vector.shape_cast %21 : vector<1x196x128xf32> to vector<196x128xf32>
    %23 = vector.shape_cast %20 : vector<196x128xf32> to vector<1x196x128xf32>
    tpu.vector_store %arg4[%c0_20, %c0_21, %c0_22], %23 {strides = array<i32>} : memref<1x196x128xf32, #tpu.memory_space<vmem>>, vector<1x196x128xf32>,
    return
  }
  func.func @transform_0(%arg0: i32) -> (i32, i32, i32, i32) {
    %c0_i32 = arith.constant 0 : i32
    %c0_i32_0 = arith.constant 0 : i32
    %c0_i32_1 = arith.constant 0 : i32
    %c0_i32_2 = arith.constant 0 : i32
    return %c0_i32, %arg0, %c0_i32_0, %c0_i32_1 : i32, i32, i32, i32
  }
  func.func @transform_1(%arg0: i32) -> (i32, i32) {
    %c0_i32 = arith.constant 0 : i32
    %c0_i32_0 = arith.constant 0 : i32
    %c0_i32_1 = arith.constant 0 : i32
    return %c0_i32, %c0_i32_0 : i32, i32
  }
  func.func @transform_2(%arg0: i32) -> (i32, i32) {
    %c0_i32 = arith.constant 0 : i32
    %c0_i32_0 = arith.constant 0 : i32
    %c0_i32_1 = arith.constant 0 : i32
    return %c0_i32, %c0_i32_0 : i32, i32
  }
  func.func @transform_3(%arg0: i32) -> (i32, i32, i32) {
    %c0_i32 = arith.constant 0 : i32
    %c0_i32_0 = arith.constant 0 : i32
    %c0_i32_1 = arith.constant 0 : i32
    return %arg0, %c0_i32, %c0_i32_0 : i32, i32, i32
  }
}

module attributes {stable_mosaic.version = 11 : i64} {
  func.func @_conv_pool_kernel(%arg0: i32, %arg1: memref<4x1x25x150xf32, #tpu.memory_space<vmem>>, %arg2: memref<150x128xf32, #tpu.memory_space<vmem>>, %arg3: memref<1x128xf32, #tpu.memory_space<vmem>>, %arg4: memref<1x25x128xf32, #tpu.memory_space<vmem>>) attributes {dimension_semantics = [#tpu.dimension_semantics<parallel>], iteration_bounds = array<i64: 2>, scalar_prefetch = 0 : i64, scratch_operands = 0 : i64, tpu.core_type = #tpu.core_type<tc>, window_params = [{transform_indices = @transform_0, window_bounds = array<i64: 4, 1, 25, 150>}, {pipeline_mode = #tpu.pipeline_mode<synchronous>, transform_indices = @transform_1, window_bounds = array<i64: 150, 128>}, {pipeline_mode = #tpu.pipeline_mode<synchronous>, transform_indices = @transform_2, window_bounds = array<i64: 1, 128>}, {transform_indices = @transform_3, window_bounds = array<i64: 1, 25, 128>}]} {
    %c0 = arith.constant 0 : index
    %c0_0 = arith.constant 0 : index
    %0 = vector.load %arg2[%c0, %c0_0] : memref<150x128xf32, #tpu.memory_space<vmem>>, vector<150x128xf32>
    %c0_1 = arith.constant 0 : index
    %c0_2 = arith.constant 0 : index
    %c0_3 = arith.constant 0 : index
    %c0_4 = arith.constant 0 : index
    %1 = vector.load %arg1[%c0_1, %c0_2, %c0_3, %c0_4] : memref<4x1x25x150xf32, #tpu.memory_space<vmem>>, vector<1x1x25x150xf32>
    %2 = vector.shape_cast %1 : vector<1x1x25x150xf32> to vector<25x150xf32>
    %cst = arith.constant dense<0.000000e+00> : vector<25x128xf32>
    %3 = tpu.matmul %2, %0, %cst {dimension_numbers = #tpu.dot_dimension_numbers<[1], [0], [0], [1], [0, 0, 1, 1], [], []>} : vector<25x150xf32>, vector<150x128xf32>, vector<25x128xf32> -> vector<25x128xf32>
    %c1 = arith.constant 1 : index
    %c0_5 = arith.constant 0 : index
    %c0_6 = arith.constant 0 : index
    %c0_7 = arith.constant 0 : index
    %4 = vector.load %arg1[%c1, %c0_5, %c0_6, %c0_7] : memref<4x1x25x150xf32, #tpu.memory_space<vmem>>, vector<1x1x25x150xf32>
    %5 = vector.shape_cast %4 : vector<1x1x25x150xf32> to vector<25x150xf32>
    %cst_8 = arith.constant dense<0.000000e+00> : vector<25x128xf32>
    %6 = tpu.matmul %5, %0, %cst_8 {dimension_numbers = #tpu.dot_dimension_numbers<[1], [0], [0], [1], [0, 0, 1, 1], [], []>} : vector<25x150xf32>, vector<150x128xf32>, vector<25x128xf32> -> vector<25x128xf32>
    %7 = arith.maximumf %3, %6 : vector<25x128xf32>
    %c2 = arith.constant 2 : index
    %c0_9 = arith.constant 0 : index
    %c0_10 = arith.constant 0 : index
    %c0_11 = arith.constant 0 : index
    %8 = vector.load %arg1[%c2, %c0_9, %c0_10, %c0_11] : memref<4x1x25x150xf32, #tpu.memory_space<vmem>>, vector<1x1x25x150xf32>
    %9 = vector.shape_cast %8 : vector<1x1x25x150xf32> to vector<25x150xf32>
    %cst_12 = arith.constant dense<0.000000e+00> : vector<25x128xf32>
    %10 = tpu.matmul %9, %0, %cst_12 {dimension_numbers = #tpu.dot_dimension_numbers<[1], [0], [0], [1], [0, 0, 1, 1], [], []>} : vector<25x150xf32>, vector<150x128xf32>, vector<25x128xf32> -> vector<25x128xf32>
    %11 = arith.maximumf %7, %10 : vector<25x128xf32>
    %c3 = arith.constant 3 : index
    %c0_13 = arith.constant 0 : index
    %c0_14 = arith.constant 0 : index
    %c0_15 = arith.constant 0 : index
    %12 = vector.load %arg1[%c3, %c0_13, %c0_14, %c0_15] : memref<4x1x25x150xf32, #tpu.memory_space<vmem>>, vector<1x1x25x150xf32>
    %13 = vector.shape_cast %12 : vector<1x1x25x150xf32> to vector<25x150xf32>
    %cst_16 = arith.constant dense<0.000000e+00> : vector<25x128xf32>
    %14 = tpu.matmul %13, %0, %cst_16 {dimension_numbers = #tpu.dot_dimension_numbers<[1], [0], [0], [1], [0, 0, 1, 1], [], []>} : vector<25x150xf32>, vector<150x128xf32>, vector<25x128xf32> -> vector<25x128xf32>
    %15 = arith.maximumf %11, %14 : vector<25x128xf32>
    %c0_17 = arith.constant 0 : index
    %c0_18 = arith.constant 0 : index
    %16 = vector.load %arg3[%c0_17, %c0_18] : memref<1x128xf32, #tpu.memory_space<vmem>>, vector<1x128xf32>
    %17 = vector.broadcast %16 : vector<1x128xf32> to vector<25x128xf32>
    %18 = arith.addf %15, %17 : vector<25x128xf32>
    %cst_19 = arith.constant 0.000000e+00 : f32
    %19 = vector.broadcast %cst_19 : f32 to vector<25x128xf32>
    %20 = arith.maximumf %18, %19 : vector<25x128xf32>
    %c0_20 = arith.constant 0 : index
    %c0_21 = arith.constant 0 : index
    %c0_22 = arith.constant 0 : index
    %21 = vector.load %arg4[%c0_20, %c0_21, %c0_22] : memref<1x25x128xf32, #tpu.memory_space<vmem>>, vector<1x25x128xf32>
    %22 = vector.shape_cast %21 : vector<1x25x128xf32> to vector<25x128xf32>
    %23 = vector.shape_cast %20 : vector<25x128xf32> to vector<1x25x128xf32>
    tpu.vector_store %arg4[%c0_20, %c0_21, %c0_22], %23 {strides = array<i32>} : memref<1x25x128xf32, #tpu.memory_space<vmem>>, vector<1x25x128xf32>,
    return
  }
  func.func @transform_0(%arg0: i32) -> (i32, i32, i32, i32) {
    %c0_i32 = arith.constant 0 : i32
    %c0_i32_0 = arith.constant 0 : i32
    %c0_i32_1 = arith.constant 0 : i32
    %c0_i32_2 = arith.constant 0 : i32
    return %c0_i32, %arg0, %c0_i32_0, %c0_i32_1 : i32, i32, i32, i32
  }
  func.func @transform_1(%arg0: i32) -> (i32, i32) {
    %c0_i32 = arith.constant 0 : i32
    %c0_i32_0 = arith.constant 0 : i32
    %c0_i32_1 = arith.constant 0 : i32
    return %c0_i32, %c0_i32_0 : i32, i32
  }
  func.func @transform_2(%arg0: i32) -> (i32, i32) {
    %c0_i32 = arith.constant 0 : i32
    %c0_i32_0 = arith.constant 0 : i32
    %c0_i32_1 = arith.constant 0 : i32
    return %c0_i32, %c0_i32_0 : i32, i32
  }
  func.func @transform_3(%arg0: i32) -> (i32, i32, i32) {
    %c0_i32 = arith.constant 0 : i32
    %c0_i32_0 = arith.constant 0 : i32
    %c0_i32_1 = arith.constant 0 : i32
    return %arg0, %c0_i32, %c0_i32_0 : i32, i32, i32
  }
}

module attributes {stable_mosaic.version = 11 : i64} {
  func.func @_fc_head_kernel(%arg0: i32, %arg1: memref<2x400xf32, #tpu.memory_space<vmem>>, %arg2: memref<400x128xf32, #tpu.memory_space<vmem>>, %arg3: memref<1x128xf32, #tpu.memory_space<vmem>>, %arg4: memref<128x128xf32, #tpu.memory_space<vmem>>, %arg5: memref<1x128xf32, #tpu.memory_space<vmem>>, %arg6: memref<128x128xf32, #tpu.memory_space<vmem>>, %arg7: memref<1x128xf32, #tpu.memory_space<vmem>>, %arg8: memref<2x128xf32, #tpu.memory_space<vmem>>) attributes {dimension_semantics = [#tpu.dimension_semantics<arbitrary>], iteration_bounds = array<i64: 1>, scalar_prefetch = 0 : i64, scratch_operands = 0 : i64, tpu.core_type = #tpu.core_type<tc>, window_params = [{pipeline_mode = #tpu.pipeline_mode<synchronous>, transform_indices = @transform_0, window_bounds = array<i64: 2, 400>}, {pipeline_mode = #tpu.pipeline_mode<synchronous>, transform_indices = @transform_1, window_bounds = array<i64: 400, 128>}, {pipeline_mode = #tpu.pipeline_mode<synchronous>, transform_indices = @transform_2, window_bounds = array<i64: 1, 128>}, {pipeline_mode = #tpu.pipeline_mode<synchronous>, transform_indices = @transform_3, window_bounds = array<i64: 128, 128>}, {pipeline_mode = #tpu.pipeline_mode<synchronous>, transform_indices = @transform_4, window_bounds = array<i64: 1, 128>}, {pipeline_mode = #tpu.pipeline_mode<synchronous>, transform_indices = @transform_5, window_bounds = array<i64: 128, 128>}, {pipeline_mode = #tpu.pipeline_mode<synchronous>, transform_indices = @transform_6, window_bounds = array<i64: 1, 128>}, {pipeline_mode = #tpu.pipeline_mode<synchronous>, transform_indices = @transform_7, window_bounds = array<i64: 2, 128>}]} {
    %c0 = arith.constant 0 : index
    %c0_0 = arith.constant 0 : index
    %0 = vector.load %arg1[%c0, %c0_0] : memref<2x400xf32, #tpu.memory_space<vmem>>, vector<2x400xf32>
    %c0_1 = arith.constant 0 : index
    %c0_2 = arith.constant 0 : index
    %1 = vector.load %arg2[%c0_1, %c0_2] : memref<400x128xf32, #tpu.memory_space<vmem>>, vector<400x128xf32>
    %cst = arith.constant dense<0.000000e+00> : vector<2x128xf32>
    %2 = tpu.matmul %0, %1, %cst {dimension_numbers = #tpu.dot_dimension_numbers<[1], [0], [0], [1], [0, 0, 1, 1], [], []>} : vector<2x400xf32>, vector<400x128xf32>, vector<2x128xf32> -> vector<2x128xf32>
    %c0_3 = arith.constant 0 : index
    %c0_4 = arith.constant 0 : index
    %3 = vector.load %arg3[%c0_3, %c0_4] : memref<1x128xf32, #tpu.memory_space<vmem>>, vector<1x128xf32>
    %4 = vector.broadcast %3 : vector<1x128xf32> to vector<2x128xf32>
    %5 = arith.addf %2, %4 : vector<2x128xf32>
    %cst_5 = arith.constant 0.000000e+00 : f32
    %6 = vector.broadcast %cst_5 : f32 to vector<2x128xf32>
    %7 = arith.maximumf %5, %6 : vector<2x128xf32>
    %c0_6 = arith.constant 0 : index
    %c0_7 = arith.constant 0 : index
    %8 = vector.load %arg4[%c0_6, %c0_7] : memref<128x128xf32, #tpu.memory_space<vmem>>, vector<128x128xf32>
    %cst_8 = arith.constant dense<0.000000e+00> : vector<2x128xf32>
    %9 = tpu.matmul %7, %8, %cst_8 {dimension_numbers = #tpu.dot_dimension_numbers<[1], [0], [0], [1], [0, 0, 1, 1], [], []>} : vector<2x128xf32>, vector<128x128xf32>, vector<2x128xf32> -> vector<2x128xf32>
    %c0_9 = arith.constant 0 : index
    %c0_10 = arith.constant 0 : index
    %10 = vector.load %arg5[%c0_9, %c0_10] : memref<1x128xf32, #tpu.memory_space<vmem>>, vector<1x128xf32>
    %11 = vector.broadcast %10 : vector<1x128xf32> to vector<2x128xf32>
    %12 = arith.addf %9, %11 : vector<2x128xf32>
    %cst_11 = arith.constant 0.000000e+00 : f32
    %13 = vector.broadcast %cst_11 : f32 to vector<2x128xf32>
    %14 = arith.maximumf %12, %13 : vector<2x128xf32>
    %c0_12 = arith.constant 0 : index
    %c0_13 = arith.constant 0 : index
    %15 = vector.load %arg6[%c0_12, %c0_13] : memref<128x128xf32, #tpu.memory_space<vmem>>, vector<128x128xf32>
    %cst_14 = arith.constant dense<0.000000e+00> : vector<2x128xf32>
    %16 = tpu.matmul %14, %15, %cst_14 {dimension_numbers = #tpu.dot_dimension_numbers<[1], [0], [0], [1], [0, 0, 1, 1], [], []>} : vector<2x128xf32>, vector<128x128xf32>, vector<2x128xf32> -> vector<2x128xf32>
    %c0_15 = arith.constant 0 : index
    %c0_16 = arith.constant 0 : index
    %17 = vector.load %arg7[%c0_15, %c0_16] : memref<1x128xf32, #tpu.memory_space<vmem>>, vector<1x128xf32>
    %18 = vector.broadcast %17 : vector<1x128xf32> to vector<2x128xf32>
    %19 = arith.addf %16, %18 : vector<2x128xf32>
    %c0_17 = arith.constant 0 : index
    %c0_18 = arith.constant 0 : index
    %20 = vector.load %arg8[%c0_17, %c0_18] : memref<2x128xf32, #tpu.memory_space<vmem>>, vector<2x128xf32>
    tpu.vector_store %arg8[%c0_17, %c0_18], %19 {strides = array<i32>} : memref<2x128xf32, #tpu.memory_space<vmem>>, vector<2x128xf32>,
    return
  }
  func.func @transform_0(%arg0: i32) -> (i32, i32) {
    %c0_i32 = arith.constant 0 : i32
    %c0_i32_0 = arith.constant 0 : i32
    %c0_i32_1 = arith.constant 0 : i32
    return %c0_i32, %c0_i32_0 : i32, i32
  }
  func.func @transform_1(%arg0: i32) -> (i32, i32) {
    %c0_i32 = arith.constant 0 : i32
    %c0_i32_0 = arith.constant 0 : i32
    %c0_i32_1 = arith.constant 0 : i32
    return %c0_i32, %c0_i32_0 : i32, i32
  }
  func.func @transform_2(%arg0: i32) -> (i32, i32) {
    %c0_i32 = arith.constant 0 : i32
    %c0_i32_0 = arith.constant 0 : i32
    %c0_i32_1 = arith.constant 0 : i32
    return %c0_i32, %c0_i32_0 : i32, i32
  }
  func.func @transform_3(%arg0: i32) -> (i32, i32) {
    %c0_i32 = arith.constant 0 : i32
    %c0_i32_0 = arith.constant 0 : i32
    %c0_i32_1 = arith.constant 0 : i32
    return %c0_i32, %c0_i32_0 : i32, i32
  }
  func.func @transform_4(%arg0: i32) -> (i32, i32) {
    %c0_i32 = arith.constant 0 : i32
    %c0_i32_0 = arith.constant 0 : i32
    %c0_i32_1 = arith.constant 0 : i32
    return %c0_i32, %c0_i32_0 : i32, i32
  }
  func.func @transform_5(%arg0: i32) -> (i32, i32) {
    %c0_i32 = arith.constant 0 : i32
    %c0_i32_0 = arith.constant 0 : i32
    %c0_i32_1 = arith.constant 0 : i32
    return %c0_i32, %c0_i32_0 : i32, i32
  }
  func.func @transform_6(%arg0: i32) -> (i32, i32) {
    %c0_i32 = arith.constant 0 : i32
    %c0_i32_0 = arith.constant 0 : i32
    %c0_i32_1 = arith.constant 0 : i32
    return %c0_i32, %c0_i32_0 : i32, i32
  }
  func.func @transform_7(%arg0: i32) -> (i32, i32) {
    %c0_i32 = arith.constant 0 : i32
    %c0_i32_0 = arith.constant 0 : i32
    %c0_i32_1 = arith.constant 0 : i32
    return %c0_i32, %c0_i32_0 : i32, i32
  }
}

</mosaic_0001>

<bundles_post_ra>
// kernel: classify_forward.3
= control target key start
LH: loop header
LB: loop body
LE: loop exit
PB: predicated region body
PF: predicated region fallthrough
CT: control target
= control target key end

     0   :  { %s2851_s12 = smov 0   ;;  %s2853_s13 = smov 0   ;;  %s3855_s0 = inlined_call_operand.vmem [shape: f32[4,2,196,75], index: 0, kind: input, shape index: {}]   ;;  %s3856_s1 = inlined_call_operand.vmem [shape: f32[75,128], index: 1, kind: input, shape index: {}]   ;;  %s3857_s2 = inlined_call_operand.vmem [shape: f32[1,128], index: 2, kind: input, shape index: {}]   ;;  %s3858_s3 = inlined_call_operand.vmem [shape: f32[2,196,128], index: 3, kind: output, shape index: {}]  }
   0x1   :  { %s2855_s14 = smov 0  }
   0x2 LB: > { %s1998_s15 = sadd.s32 4294967295, %s2825_s14   ;;  %s2868_s16 = sadd.s32 1, %s2825_s14   ;;  %s2825_s14 = sphi %s2855_s14, %s3886_s14   ;;  %s2821_s13 = sphi %s2853_s13, %s3885_s13   ;;  %s2817_s12 = sphi %s2851_s12, %s3884_s12  }
   0x3   : > { %s17_s17 = ssub.s32 %s2825_s14, %s2868_s16  ;;  %s20_s18 = sadd.s32 1, %s2821_s13 }
   0x4   : > { %p18_p0 = scmp.eq.s32.totalorder %s17_s17, 0  ;;  %p27_p1 = scmp.ne.s32.totalorder %s2821_s13, %s2817_s12 }
   0x5   : > { %p28_p2 = scmp.eq.s32.totalorder %s2825_s14, 0  ;;  %p2001_p4 = scmp.ge.s32.totalorder %s2825_s14, 2 }
   0x6   : > { %s2877_s19 = scalar_select %p18_p0, %s2821_s13, %s20_s18  }
   0x7   : > { %p29_p3 = por %p28_p2, %p27_p1  ;;  %127 = sbr.rel (%p2001_p4) target bundleno = 69 (0x45), region = 24 }
   0xe   : > { %130 = sbr.rel (!%p29_p3) target bundleno = 69 (0x45), region = 28  ;;  %s132_s20 = sand.u32 (%p29_p3), 1, %s2821_s13  }
   0xf   : > { %s2772_s21 = smul.u32 (%p29_p3), 200, %s2825_s14 }
  0x10   : > { %s2771_s22 = smul.u32 (%p29_p3), 800, %s132_s20 }
  0x11   : > { %s2885_s25 = scalar_lea.vmem (%p29_p3), %s3855_s0, %s2772_s21 }
  0x12   : > { %v363_v0 = vld [vmem:[%s2885_s25] sm:$0xff] (%p29_p3)  ;;  %v365_v1 = vld [vmem:[%s2885_s25 + $0x8] sm:$0xff] (%p29_p3)  ;;  %v367_v2 = vld [vmem:[%s2885_s25 + $0x10] sm:$0xff] (%p29_p3)  ;;  %s2890_s26 = scalar_lea.vmem (%p29_p3), [#allocation2], %s2771_s22 }
  0x13   : > { %364 = vst [vmem:[%s2890_s26] sm:$0xff] (%p29_p3), %v363_v0  ;;  %366 = vst [vmem:[%s2890_s26 + $0x8] sm:$0xff] (%p29_p3), %v365_v1  ;;  %v369_v3 = vld [vmem:[%s2885_s25 + $0x18] sm:$0xff] (%p29_p3)  ;;  %v371_v4 = vld [vmem:[%s2885_s25 + $0x20] sm:$0xff] (%p29_p3) }
  0x14   : > { %368 = vst [vmem:[%s2890_s26 + $0x10] sm:$0xff] (%p29_p3), %v367_v2  ;;  %v373_v5 = vld [vmem:[%s2885_s25 + $0x28] sm:$0xff] (%p29_p3)  ;;  %370 = vst [vmem:[%s2890_s26 + $0x18] sm:$0xff] (%p29_p3), %v369_v3  ;;  %v375_v6 = vld [vmem:[%s2885_s25 + $0x30] sm:$0xff] (%p29_p3) }
  0x15   : > { %372 = vst [vmem:[%s2890_s26 + $0x20] sm:$0xff] %v371_v4  ;;  %374 = vst [vmem:[%s2890_s26 + $0x28] sm:$0xff] %v373_v5  ;;  %v377_v7 = vld [vmem:[%s2885_s25 + $0x38] sm:$0xff]  ;;  %v379_v8 = vld [vmem:[%s2885_s25 + $0x40] sm:$0xff] }
  0x16   : > { %376 = vst [vmem:[%s2890_s26 + $0x30] sm:$0xff] %v375_v6  ;;  %378 = vst [vmem:[%s2890_s26 + $0x38] sm:$0xff] %v377_v7  ;;  %v381_v9 = vld [vmem:[%s2885_s25 + $0x48] sm:$0xff]  ;;  %v383_v10 = vld [vmem:[%s2885_s25 + $0x50] sm:$0xff] }
  0x17   : > { %380 = vst [vmem:[%s2890_s26 + $0x40] sm:$0xff] %v379_v8  ;;  %v385_v11 = vld [vmem:[%s2885_s25 + $0x58] sm:$0xff]  ;;  %382 = vst [vmem:[%s2890_s26 + $0x48] sm:$0xff] %v381_v9  ;;  %v387_v12 = vld [vmem:[%s2885_s25 + $0x60] sm:$0xff] }
  0x18   : > { %384 = vst [vmem:[%s2890_s26 + $0x50] sm:$0xff] %v383_v10  ;;  %386 = vst [vmem:[%s2890_s26 + $0x58] sm:$0xff] %v385_v11  ;;  %v389_v13 = vld [vmem:[%s2885_s25 + $0x68] sm:$0xff]  ;;  %v391_v14 = vld [vmem:[%s2885_s25 + $0x70] sm:$0xff] }
  0x19   : > { %388 = vst [vmem:[%s2890_s26 + $0x60] sm:$0xff] %v387_v12  ;;  %390 = vst [vmem:[%s2890_s26 + $0x68] sm:$0xff] %v389_v13  ;;  %v393_v15 = vld [vmem:[%s2885_s25 + $0x78] sm:$0xff]  ;;  %v395_v16 = vld [vmem:[%s2885_s25 + $0x80] sm:$0xff] }
  0x1a   : > { %392 = vst [vmem:[%s2890_s26 + $0x70] sm:$0xff] %v391_v14  ;;  %v397_v17 = vld [vmem:[%s2885_s25 + $0x88] sm:$0xff]  ;;  %394 = vst [vmem:[%s2890_s26 + $0x78] sm:$0xff] %v393_v15  ;;  %v399_v18 = vld [vmem:[%s2885_s25 + $0x90] sm:$0xff] }
  0x1b   : > { %396 = vst [vmem:[%s2890_s26 + $0x80] sm:$0xff] %v395_v16  ;;  %398 = vst [vmem:[%s2890_s26 + $0x88] sm:$0xff] %v397_v17  ;;  %v401_v19 = vld [vmem:[%s2885_s25 + $0x98] sm:$0xff]  ;;  %v403_v20 = vld [vmem:[%s2885_s25 + $0xa0] sm:$0xff] }
  0x1c   : > { %400 = vst [vmem:[%s2890_s26 + $0x90] sm:$0xff] %v399_v18  ;;  %402 = vst [vmem:[%s2890_s26 + $0x98] sm:$0xff] %v401_v19  ;;  %v405_v21 = vld [vmem:[%s2885_s25 + $0xa8] sm:$0xff]  ;;  %v407_v22 = vld [vmem:[%s2885_s25 + $0xb0] sm:$0xff] }
  0x1d   : > { %404 = vst [vmem:[%s2890_s26 + $0xa0] sm:$0xff] %v403_v20  ;;  %v409_v23 = vld [vmem:[%s2885_s25 + $0xb8] sm:$0xff]  ;;  %406 = vst [vmem:[%s2890_s26 + $0xa8] sm:$0xff] %v405_v21  ;;  %v411_v24 = vld [vmem:[%s2885_s25 + $0xc0] sm:$0xff] }
  0x1e   : > { %408 = vst [vmem:[%s2890_s26 + $0xb0] sm:$0xff] %v407_v22  ;;  %410 = vst [vmem:[%s2890_s26 + $0xb8] sm:$0xff] %v409_v23  ;;  %v413_v25 = vld [vmem:[%s2885_s25 + $0x190] sm:$0xff]  ;;  %v415_v26 = vld [vmem:[%s2885_s25 + $0x198] sm:$0xff] }
  0x1f   : > { %412 = vst [vmem:[%s2890_s26 + $0xc0] sm:$0xff] %v411_v24  ;;  %414 = vst [vmem:[%s2890_s26 + $0xc8] sm:$0xff] %v413_v25  ;;  %v417_v27 = vld [vmem:[%s2885_s25 + $0x1a0] sm:$0xff]  ;;  %v419_v28 = vld [vmem:[%s2885_s25 + $0x1a8] sm:$0xff] }
  0x20   : > { %416 = vst [vmem:[%s2890_s26 + $0xd0] sm:$0xff] %v415_v26  ;;  %v421_v29 = vld [vmem:[%s2885_s25 + $0x1b0] sm:$0xff]  ;;  %418 = vst [vmem:[%s2890_s26 + $0xd8] sm:$0xff] %v417_v27  ;;  %v423_v30 = vld [vmem:[%s2885_s25 + $0x1b8] sm:$0xff] }
  0x21   : > { %420 = vst [vmem:[%s2890_s26 + $0xe0] sm:$0xff] %v419_v28  ;;  %422 = vst [vmem:[%s2890_s26 + $0xe8] sm:$0xff] %v421_v29  ;;  %v425_v31 = vld [vmem:[%s2885_s25 + $0x1c0] sm:$0xff]  ;;  %v427_v32 = vld [vmem:[%s2885_s25 + $0x1c8] sm:$0xff] }
  0x22   : > { %424 = vst [vmem:[%s2890_s26 + $0xf0] sm:$0xff] %v423_v30  ;;  %426 = vst [vmem:[%s2890_s26 + $0xf8] sm:$0xff] %v425_v31  ;;  %v429_v33 = vld [vmem:[%s2885_s25 + $0x1d0] sm:$0xff]  ;;  %v431_v34 = vld [vmem:[%s2885_s25 + $0x1d8] sm:$0xff] }
  0x23   : > { %428 = vst [vmem:[%s2890_s26 + $0x100] sm:$0xff] %v427_v32  ;;  %v433_v35 = vld [vmem:[%s2885_s25 + $0x1e0] sm:$0xff]  ;;  %430 = vst [vmem:[%s2890_s26 + $0x108] sm:$0xff] %v429_v33  ;;  %v435_v36 = vld [vmem:[%s2885_s25 + $0x1e8] sm:$0xff] }
  0x24   : > { %432 = vst [vmem:[%s2890_s26 + $0x110] sm:$0xff] %v431_v34  ;;  %434 = vst [vmem:[%s2890_s26 + $0x118] sm:$0xff] %v433_v35  ;;  %v437_v37 = vld [vmem:[%s2885_s25 + $0x1f0] sm:$0xff]  ;;  %v439_v38 = vld [vmem:[%s2885_s25 + $0x1f8] sm:$0xff] }
  0x25   : > { %436 = vst [vmem:[%s2890_s26 + $0x120] sm:$0xff] %v435_v36  ;;  %438 = vst [vmem:[%s2890_s26 + $0x128] sm:$0xff] %v437_v37  ;;  %v441_v39 = vld [vmem:[%s2885_s25 + $0x200] sm:$0xff]  ;;  %v443_v40 = vld [vmem:[%s2885_s25 + $0x208] sm:$0xff] }
  0x26   : > { %440 = vst [vmem:[%s2890_s26 + $0x130] sm:$0xff] %v439_v38  ;;  %v445_v41 = vld [vmem:[%s2885_s25 + $0x210] sm:$0xff]  ;;  %442 = vst [vmem:[%s2890_s26 + $0x138] sm:$0xff] %v441_v39  ;;  %v447_v42 = vld [vmem:[%s2885_s25 + $0x218] sm:$0xff] }
  0x27   : > { %444 = vst [vmem:[%s2890_s26 + $0x140] sm:$0xff] %v443_v40  ;;  %446 = vst [vmem:[%s2890_s26 + $0x148] sm:$0xff] %v445_v41  ;;  %v449_v43 = vld [vmem:[%s2885_s25 + $0x220] sm:$0xff]  ;;  %v451_v44 = vld [vmem:[%s2885_s25 + $0x228] sm:$0xff] }
  0x28   : > { %448 = vst [vmem:[%s2890_s26 + $0x150] sm:$0xff] %v447_v42  ;;  %450 = vst [vmem:[%s2890_s26 + $0x158] sm:$0xff] %v449_v43  ;;  %v453_v45 = vld [vmem:[%s2885_s25 + $0x230] sm:$0xff]  ;;  %v455_v46 = vld [vmem:[%s2885_s25 + $0x238] sm:$0xff] }
  0x29   : > { %452 = vst [vmem:[%s2890_s26 + $0x160] sm:$0xff] %v451_v44  ;;  %v457_v47 = vld [vmem:[%s2885_s25 + $0x240] sm:$0xff]  ;;  %454 = vst [vmem:[%s2890_s26 + $0x168] sm:$0xff] %v453_v45  ;;  %v459_v48 = vld [vmem:[%s2885_s25 + $0x248] sm:$0xff] }
  0x2a   : > { %456 = vst [vmem:[%s2890_s26 + $0x170] sm:$0xff] %v455_v46  ;;  %458 = vst [vmem:[%s2890_s26 + $0x178] sm:$0xff] %v457_v47  ;;  %v461_v49 = vld [vmem:[%s2885_s25 + $0x250] sm:$0xff]  ;;  %v463_v50 = vld [vmem:[%s2885_s25 + $0x320] sm:$0xff] }
  0x2b   : > { %460 = vst [vmem:[%s2890_s26 + $0x180] sm:$0xff] %v459_v48  ;;  %462 = vst [vmem:[%s2890_s26 + $0x188] sm:$0xff] %v461_v49  ;;  %v465_v51 = vld [vmem:[%s2885_s25 + $0x328] sm:$0xff]  ;;  %v467_v52 = vld [vmem:[%s2885_s25 + $0x330] sm:$0xff] }
  0x2c   : > { %464 = vst [vmem:[%s2890_s26 + $0x190] sm:$0xff] %v463_v50  ;;  %v469_v53 = vld [vmem:[%s2885_s25 + $0x338] sm:$0xff]  ;;  %466 = vst [vmem:[%s2890_s26 + $0x198] sm:$0xff] %v465_v51  ;;  %v471_v54 = vld [vmem:[%s2885_s25 + $0x340] sm:$0xff] }
  0x2d   : > { %468 = vst [vmem:[%s2890_s26 + $0x1a0] sm:$0xff] %v467_v52  ;;  %470 = vst [vmem:[%s2890_s26 + $0x1a8] sm:$0xff] %v469_v53  ;;  %v473_v55 = vld [vmem:[%s2885_s25 + $0x348] sm:$0xff]  ;;  %v475_v56 = vld [vmem:[%s2885_s25 + $0x350] sm:$0xff] }
  0x2e   : > { %472 = vst [vmem:[%s2890_s26 + $0x1b0] sm:$0xff] %v471_v54  ;;  %474 = vst [vmem:[%s2890_s26 + $0x1b8] sm:$0xff] %v473_v55  ;;  %v477_v57 = vld [vmem:[%s2885_s25 + $0x358] sm:$0xff]  ;;  %v479_v58 = vld [vmem:[%s2885_s25 + $0x360] sm:$0xff] }
  0x2f   : > { %476 = vst [vmem:[%s2890_s26 + $0x1c0] sm:$0xff] %v475_v56  ;;  %v481_v59 = vld [vmem:[%s2885_s25 + $0x368] sm:$0xff]  ;;  %478 = vst [vmem:[%s2890_s26 + $0x1c8] sm:$0xff] %v477_v57  ;;  %v483_v60 = vld [vmem:[%s2885_s25 + $0x370] sm:$0xff] }
  0x30   : > { %480 = vst [vmem:[%s2890_s26 + $0x1d0] sm:$0xff] %v479_v58  ;;  %482 = vst [vmem:[%s2890_s26 + $0x1d8] sm:$0xff] %v481_v59  ;;  %v485_v61 = vld [vmem:[%s2885_s25 + $0x378] sm:$0xff]  ;;  %v487_v62 = vld [vmem:[%s2885_s25 + $0x380] sm:$0xff] }
  0x31   : > { %484 = vst [vmem:[%s2890_s26 + $0x1e0] sm:$0xff] %v483_v60  ;;  %486 = vst [vmem:[%s2890_s26 + $0x1e8] sm:$0xff] %v485_v61  ;;  %v489_v63 = vld [vmem:[%s2885_s25 + $0x388] sm:$0xff]  ;;  %v491_v0 = vld [vmem:[%s2885_s25 + $0x390] sm:$0xff] }
  0x32   : > { %488 = vst [vmem:[%s2890_s26 + $0x1f0] sm:$0xff] %v487_v62  ;;  %v493_v1 = vld [vmem:[%s2885_s25 + $0x398] sm:$0xff]  ;;  %490 = vst [vmem:[%s2890_s26 + $0x1f8] sm:$0xff] %v489_v63  ;;  %v495_v2 = vld [vmem:[%s2885_s25 + $0x3a0] sm:$0xff] }
  0x33   : > { %492 = vst [vmem:[%s2890_s26 + $0x200] sm:$0xff] %v491_v0  ;;  %494 = vst [vmem:[%s2890_s26 + $0x208] sm:$0xff] %v493_v1  ;;  %v497_v3 = vld [vmem:[%s2885_s25 + $0x3a8] sm:$0xff]  ;;  %v499_v4 = vld [vmem:[%s2885_s25 + $0x3b0] sm:$0xff] }
  0x34   : > { %496 = vst [vmem:[%s2890_s26 + $0x210] sm:$0xff] %v495_v2  ;;  %498 = vst [vmem:[%s2890_s26 + $0x218] sm:$0xff] %v497_v3  ;;  %v501_v5 = vld [vmem:[%s2885_s25 + $0x3b8] sm:$0xff]  ;;  %v503_v6 = vld [vmem:[%s2885_s25 + $0x3c0] sm:$0xff] }
  0x35   : > { %500 = vst [vmem:[%s2890_s26 + $0x220] sm:$0xff] %v499_v4  ;;  %v505_v7 = vld [vmem:[%s2885_s25 + $0x3c8] sm:$0xff]  ;;  %502 = vst [vmem:[%s2890_s26 + $0x228] sm:$0xff] %v501_v5  ;;  %v507_v8 = vld [vmem:[%s2885_s25 + $0x3d0] sm:$0xff] }
  0x36   : > { %504 = vst [vmem:[%s2890_s26 + $0x230] sm:$0xff] %v503_v6  ;;  %506 = vst [vmem:[%s2890_s26 + $0x238] sm:$0xff] %v505_v7  ;;  %v509_v9 = vld [vmem:[%s2885_s25 + $0x3d8] sm:$0xff]  ;;  %v511_v10 = vld [vmem:[%s2885_s25 + $0x3e0] sm:$0xff] }
  0x37   : > { %508 = vst [vmem:[%s2890_s26 + $0x240] sm:$0xff] %v507_v8  ;;  %510 = vst [vmem:[%s2890_s26 + $0x248] sm:$0xff] %v509_v9  ;;  %v513_v11 = vld [vmem:[%s2885_s25 + $0x4b0] sm:$0xff]  ;;  %v515_v12 = vld [vmem:[%s2885_s25 + $0x4b8] sm:$0xff] }
  0x38   : > { %512 = vst [vmem:[%s2890_s26 + $0x250] sm:$0xff] %v511_v10  ;;  %v517_v13 = vld [vmem:[%s2885_s25 + $0x4c0] sm:$0xff]  ;;  %514 = vst [vmem:[%s2890_s26 + $0x258] sm:$0xff] %v513_v11  ;;  %v519_v14 = vld [vmem:[%s2885_s25 + $0x4c8] sm:$0xff] }
  0x39   : > { %516 = vst [vmem:[%s2890_s26 + $0x260] sm:$0xff] %v515_v12  ;;  %518 = vst [vmem:[%s2890_s26 + $0x268] sm:$0xff] %v517_v13  ;;  %v521_v15 = vld [vmem:[%s2885_s25 + $0x4d0] sm:$0xff]  ;;  %v523_v16 = vld [vmem:[%s2885_s25 + $0x4d8] sm:$0xff] }
  0x3a   : > { %520 = vst [vmem:[%s2890_s26 + $0x270] sm:$0xff] %v519_v14  ;;  %522 = vst [vmem:[%s2890_s26 + $0x278] sm:$0xff] %v521_v15  ;;  %v525_v17 = vld [vmem:[%s2885_s25 + $0x4e0] sm:$0xff]  ;;  %v527_v18 = vld [vmem:[%s2885_s25 + $0x4e8] sm:$0xff] }
  0x3b   : > { %524 = vst [vmem:[%s2890_s26 + $0x280] sm:$0xff] %v523_v16  ;;  %v529_v19 = vld [vmem:[%s2885_s25 + $0x4f0] sm:$0xff]  ;;  %526 = vst [vmem:[%s2890_s26 + $0x288] sm:$0xff] %v525_v17  ;;  %v531_v20 = vld [vmem:[%s2885_s25 + $0x4f8] sm:$0xff] }
  0x3c   : > { %528 = vst [vmem:[%s2890_s26 + $0x290] sm:$0xff] %v527_v18  ;;  %530 = vst [vmem:[%s2890_s26 + $0x298] sm:$0xff] %v529_v19  ;;  %v533_v21 = vld [vmem:[%s2885_s25 + $0x500] sm:$0xff]  ;;  %v535_v22 = vld [vmem:[%s2885_s25 + $0x508] sm:$0xff] }
  0x3d   : > { %532 = vst [vmem:[%s2890_s26 + $0x2a0] sm:$0xff] %v531_v20  ;;  %534 = vst [vmem:[%s2890_s26 + $0x2a8] sm:$0xff] %v533_v21  ;;  %v537_v23 = vld [vmem:[%s2885_s25 + $0x510] sm:$0xff]  ;;  %v539_v24 = vld [vmem:[%s2885_s25 + $0x518] sm:$0xff] }
  0x3e   : > { %536 = vst [vmem:[%s2890_s26 + $0x2b0] sm:$0xff] %v535_v22  ;;  %v541_v25 = vld [vmem:[%s2885_s25 + $0x520] sm:$0xff]  ;;  %538 = vst [vmem:[%s2890_s26 + $0x2b8] sm:$0xff] %v537_v23  ;;  %v543_v26 = vld [vmem:[%s2885_s25 + $0x528] sm:$0xff] }
  0x3f   : > { %540 = vst [vmem:[%s2890_s26 + $0x2c0] sm:$0xff] %v539_v24  ;;  %542 = vst [vmem:[%s2890_s26 + $0x2c8] sm:$0xff] %v541_v25  ;;  %v545_v27 = vld [vmem:[%s2885_s25 + $0x530] sm:$0xff]  ;;  %v547_v28 = vld [vmem:[%s2885_s25 + $0x538] sm:$0xff] }
  0x40   : > { %544 = vst [vmem:[%s2890_s26 + $0x2d0] sm:$0xff] %v543_v26  ;;  %546 = vst [vmem:[%s2890_s26 + $0x2d8] sm:$0xff] %v545_v27  ;;  %v549_v29 = vld [vmem:[%s2885_s25 + $0x540] sm:$0xff]  ;;  %v551_v30 = vld [vmem:[%s2885_s25 + $0x548] sm:$0xff] }
  0x41   : > { %548 = vst [vmem:[%s2890_s26 + $0x2e0] sm:$0xff] %v547_v28  ;;  %v553_v31 = vld [vmem:[%s2885_s25 + $0x550] sm:$0xff]  ;;  %550 = vst [vmem:[%s2890_s26 + $0x2e8] sm:$0xff] %v549_v29  ;;  %v555_v32 = vld [vmem:[%s2885_s25 + $0x558] sm:$0xff] }
  0x42   : > { %552 = vst [vmem:[%s2890_s26 + $0x2f0] sm:$0xff] %v551_v30  ;;  %554 = vst [vmem:[%s2890_s26 + $0x2f8] sm:$0xff] %v553_v31  ;;  %v557_v33 = vld [vmem:[%s2885_s25 + $0x560] sm:$0xff]  ;;  %v559_v34 = vld [vmem:[%s2885_s25 + $0x568] sm:$0xff] }
  0x43   : > { %556 = vst [vmem:[%s2890_s26 + $0x300] sm:$0xff] %v555_v32  ;;  %558 = vst [vmem:[%s2890_s26 + $0x308] sm:$0xff] %v557_v33  ;;  %v561_v35 = vld [vmem:[%s2885_s25 + $0x570] sm:$0xff] }
  0x44   : > { %560 = vst [vmem:[%s2890_s26 + $0x310] sm:$0xff] %v559_v34  ;;  %562 = vst [vmem:[%s2890_s26 + $0x318] sm:$0xff] %v561_v35 }
  0x45 PF: > { %p2003_p5 = scmp.ge.s32.totalorder %s2825_s14, 1  ;;  %p567_p6 = scmp.lt.s32.totalorder %s2825_s14, 3 }
  0x47   : > { %p568_p7 = pnand %p2003_p5, %p567_p6 }
  0x48   : > { %v602_v36 = vld [vmem:[%s3856_s1] sm:$0xff] (!%p568_p7)  ;;  %v603_v37 = vld [vmem:[%s3856_s1 + $0x8] sm:$0xff] (!%p568_p7)  ;;  %v604_v38 = vld [vmem:[%s3856_s1 + $0x10] sm:$0xff] (!%p568_p7)  ;;  %v2827_v39 = vmov (!%p568_p7), 0.0|0.0   ;;  %vm2828_vm0 = vmmov (!%p568_p7), 0   ;;  %v2829_v42 = vmov (!%p568_p7), 0.0  }
  0x49   : > { %571 = sbr.rel (%p568_p7) target bundleno = 511 (0x1ff), region = 66  ;;  %2707 = vmatprep.subr.bf16.mxu0 (!%p568_p7), %v2827_v39  ;;  %v2708_v40 = vpack.c.bf16 (!%p568_p7), %v603_v37, %v602_v36  ;;  %2723 = vmatprep.subr.bf16.mxu1 (!%p568_p7), %v2827_v39  ;;  %v605_v41 = vld [vmem:[%s3856_s1 + $0x18] sm:$0xff] (!%p568_p7)  ;;  %v606_v44 = vld [vmem:[%s3856_s1 + $0x20] sm:$0xff] (!%p568_p7)  ;;  %v607_v45 = vld [vmem:[%s3856_s1 + $0x28] sm:$0xff] (!%p568_p7)  ;;  %s574_s22 = sand.u32 (!%p568_p7), 1, %s2817_s12   ;;  %vm713_vm1 = vcmask (!%p568_p7), 1042432  }
  0x4a   : > { %2347 = vmatprep.mubr.msk.f32.mxu0 (!%p568_p7), %vm2828_vm0, %v2829_v42  ;;  %2442 = vmatprep.mubr.msk.f32.mxu1 (!%p568_p7), %vm2828_vm0, %v2829_v42  ;;  %v2711_v43 = vpack.c.bf16 (!%p568_p7), %v605_v41, %v604_v38  ;;  %v2714_v46 = vpack.c.bf16 (!%p568_p7), %v607_v45, %v606_v44  ;;  %v608_v47 = vld [vmem:[%s3856_s1 + $0x30] sm:$0xff] (!%p568_p7)  ;;  %v609_v48 = vld [vmem:[%s3856_s1 + $0x38] sm:$0xff] (!%p568_p7)  ;;  %v610_v50 = vld [vmem:[%s3856_s1 + $0x40] sm:$0xff] (!%p568_p7)  ;;  %s2773_s27 = smul.u32 (!%p568_p7), 800, %s574_s22  ;;  %vm2830_vm2 = vmmov (!%p568_p7), 1   ;;  %vm637_vm4 = vcmask (!%p568_p7), 613376  }
  0x4b   : > { %2709 = vmatpush3.bf16.msra.mxu0 (!%p568_p7), %v2708_v40  ;;  %2725 = vmatpush3.bf16.msra.mxu1 (!%p568_p7), %v2708_v40  ;;  %v2717_v49 = vpack.c.bf16 (!%p568_p7), %v609_v48, %v608_v47  ;;  %v611_v51 = vld [vmem:[%s3856_s1 + $0x48] sm:$0x7] (!%p568_p7)  ;;  %vm3135_vm3 = vmpackc.low (!%p568_p7), %vm713_vm1, %vm2830_vm2  ;;  %p597_p8 = scmp.lt.s32.totalorder (!%p568_p7), %s1998_s15, 1 }
  0x4c   : > { %2710 = vmatprep.subr.bf16.mxu0 (!%p568_p7), %v2827_v39  ;;  %2726 = vmatprep.subr.bf16.mxu1 (!%p568_p7), %v2827_v39  ;;  %v2720_v52 = vpack.c.bf16 (!%p568_p7), %v611_v51, %v610_v50  ;;  %s3144_s12 = scalar_lea.vmem (!%p568_p7), [#allocation2], %s2773_s27 }
  0x4d   : > { %v612_v54 = vld [vmem:[%s3144_s12] sm:$0xff] (!%p568_p7)  ;;  %v2031_v55 = vld [vmem:[%s3144_s12 + $0xc8] sm:$0xff] (!%p568_p7)  ;;  %v2032_v57 = vld [vmem:[%s3144_s12 + $0xd0] sm:$0xff] (!%p568_p7) }
  0x4e   : > { %v613_v56 = vld [vmem:[%s3144_s12 + $0x8] sm:$0xff] (!%p568_p7)  ;;  %v614_v58 = vld [vmem:[%s3144_s12 + $0x10] sm:$0xff] (!%p568_p7)  ;;  %v2033_v59 = vld [vmem:[%s3144_s12 + $0xd8] sm:$0xff] (!%p568_p7) }
  0x4f   : > { %2712 = vmatpush3.bf16.msra.mxu0 (!%p568_p7), %v2711_v43  ;;  %2728 = vmatpush3.bf16.msra.mxu1 (!%p568_p7), %v2711_v43  ;;  %v615_v60 = vld [vmem:[%s3144_s12 + $0x18] sm:$0xff] (!%p568_p7)  ;;  %v2034_v61 = vld [vmem:[%s3144_s12 + $0xe0] sm:$0xff] (!%p568_p7)  ;;  %v2035_v63 = vld [vmem:[%s3144_s12 + $0xe8] sm:$0xff] (!%p568_p7) }
  0x50   : > { %2713 = vmatprep.subr.bf16.mxu0 %v2827_v39  ;;  %2729 = vmatprep.subr.bf16.mxu1 %v2827_v39  ;;  %v616_v62 = vld [vmem:[%s3144_s12 + $0x20] sm:$0xff]  ;;  %v617_v0 = vld [vmem:[%s3144_s12 + $0x28] sm:$0xff]  ;;  %v2036_v1 = vld [vmem:[%s3144_s12 + $0xf0] sm:$0xff]  ;;  %s3888_s15 = smov (!%p597_p8, %s1998_s15), 1 }
  0x51   : > { %v618_v2 = vld [vmem:[%s3144_s12 + $0x30] sm:$0xff]  ;;  %v2037_v3 = vld [vmem:[%s3144_s12 + $0xf8] sm:$0xff]  ;;  %v2038_v5 = vld [vmem:[%s3144_s12 + $0x100] sm:$0xff]  ;;  %s2774_s28 = smul.u32 200, %s3888_s15 }
  0x52   : > { %v619_v4 = vld [vmem:[%s3144_s12 + $0x38] sm:$0xff]  ;;  %v620_v6 = vld [vmem:[%s3144_s12 + $0x40] sm:$0xff]  ;;  %v2039_v7 = vld [vmem:[%s3144_s12 + $0x108] sm:$0xff] }
  0x53   : > { %2715 = vmatpush3.bf16.msra.mxu0 %v2714_v46  ;;  %2731 = vmatpush3.bf16.msra.mxu1 %v2714_v46  ;;  %v621_v8 = vld [vmem:[%s3144_s12 + $0x48] sm:$0xff]  ;;  %v2040_v9 = vld [vmem:[%s3144_s12 + $0x110] sm:$0xff]  ;;  %v2041_v11 = vld [vmem:[%s3144_s12 + $0x118] sm:$0xff]  ;;  %s3725_s15 = scalar_lea.vmem %s3858_s3, %s2774_s28 }
  0x54   : > { %2716 = vmatprep.subr.bf16.mxu0 %v2827_v39  ;;  %2732 = vmatprep.subr.bf16.mxu1 %v2827_v39  ;;  %v622_v10 = vld [vmem:[%s3144_s12 + $0x50] sm:$0xff]  ;;  %v623_v12 = vld [vmem:[%s3144_s12 + $0x58] sm:$0xff]  ;;  %v2042_v13 = vld [vmem:[%s3144_s12 + $0x120] sm:$0xff] }
  0x55   : > { %v624_v14 = vld [vmem:[%s3144_s12 + $0x60] sm:$0xff]  ;;  %v2043_v15 = vld [vmem:[%s3144_s12 + $0x128] sm:$0xff]  ;;  %v2044_v17 = vld [vmem:[%s3144_s12 + $0x130] sm:$0xff] }
  0x56   : > { %v625_v16 = vld [vmem:[%s3144_s12 + $0x68] sm:$0xff]  ;;  %v626_v18 = vld [vmem:[%s3144_s12 + $0x70] sm:$0xff]  ;;  %v2045_v19 = vld [vmem:[%s3144_s12 + $0x138] sm:$0xff] }
  0x57   : > { %2718 = vmatpush3.bf16.msra.mxu0 %v2717_v49  ;;  %2734 = vmatpush3.bf16.msra.mxu1 %v2717_v49  ;;  %v627_v20 = vld [vmem:[%s3144_s12 + $0x78] sm:$0xff]  ;;  %v2046_v21 = vld [vmem:[%s3144_s12 + $0x140] sm:$0xff]  ;;  %v2047_v23 = vld [vmem:[%s3144_s12 + $0x148] sm:$0xff] }
  0x58   : > { %2719 = vmatprep.subr.bf16.mxu0 %v2827_v39  ;;  %2735 = vmatprep.subr.bf16.mxu1 %v2827_v39  ;;  %v628_v22 = vld [vmem:[%s3144_s12 + $0x80] sm:$0xff]  ;;  %v629_v24 = vld [vmem:[%s3144_s12 + $0x88] sm:$0xff]  ;;  %v2048_v25 = vld [vmem:[%s3144_s12 + $0x150] sm:$0xff] }
  0x59   : > { %v630_v26 = vld [vmem:[%s3144_s12 + $0x90] sm:$0xff]  ;;  %v2049_v27 = vld [vmem:[%s3144_s12 + $0x158] sm:$0xff]  ;;  %v2050_v29 = vld [vmem:[%s3144_s12 + $0x160] sm:$0xff] }
  0x5a   : > { %v631_v28 = vld [vmem:[%s3144_s12 + $0x98] sm:$0xff]  ;;  %v632_v30 = vld [vmem:[%s3144_s12 + $0xa0] sm:$0xff]  ;;  %v2051_v31 = vld [vmem:[%s3144_s12 + $0x168] sm:$0xff] }
  0x5b   : > { %2722 = vmatpush3.bf16.msk.msra.mxu0 %vm3135_vm3, %v2720_v52  ;;  %2738 = vmatpush3.bf16.msk.msra.mxu1 %vm3135_vm3, %v2720_v52  ;;  %v633_v32 = vld [vmem:[%s3144_s12 + $0xa8] sm:$0xff]  ;;  %v2052_v33 = vld [vmem:[%s3144_s12 + $0x170] sm:$0xff]  ;;  %v2053_v35 = vld [vmem:[%s3144_s12 + $0x178] sm:$0xff] }
  0x5c   : > { %2739 = vmatprep.subr.bf16.mxu0 %v2827_v39  ;;  %2755 = vmatprep.subr.bf16.mxu1 %v2827_v39  ;;  %v634_v34 = vld [vmem:[%s3144_s12 + $0xb0] sm:$0xff]  ;;  %v635_v36 = vld [vmem:[%s3144_s12 + $0xb8] sm:$0xff]  ;;  %v2054_v37 = vld [vmem:[%s3144_s12 + $0x180] sm:$0xff] }
  0x5d   : > { %v636_v38 = vld [vmem:[%s3144_s12 + $0xc0] sm:$0xf]  ;;  %v2133_v41 = vld [vmem:[%s3144_s12 + $0x258] sm:$0xff]  ;;  %v2085_v47 = vld [vmem:[%s3144_s12 + $0x1a8] sm:$0xff] }
  0x5e   : > { %2348 = vmatmul.mubr.msk.f32.vlgmr.msra.gmra.mrb[0].mxu0 %vm637_vm4, %v612_v54  ;;  %2443 = vmatmul.mubr.msk.f32.vlgmr.msra.gmra.mrb[0].mxu1 %vm637_vm4, %v2031_v55  ;;  %v2134_v44 = vld [vmem:[%s3144_s12 + $0x260] sm:$0xff]  ;;  %v2136_v48 = vld [vmem:[%s3144_s12 + $0x270] sm:$0xff]  ;;  %v2137_v50 = vld [vmem:[%s3144_s12 + $0x278] sm:$0xff] }
  0x5f   : > { %2741 = vmatpush3.bf16.msra.mxu0 %v2708_v40  ;;  %2350 = vmatprep.mubr.msk.f32.mxu0 %vm2828_vm0, %v2829_v42  ;;  %v2084_v45 = vld [vmem:[%s3144_s12 + $0x1a0] sm:$0xff]  ;;  %v2087_v51 = vld [vmem:[%s3144_s12 + $0x1b8] sm:$0xff]  ;;  %v2139_v54 = vld [vmem:[%s3144_s12 + $0x288] sm:$0xff] }
  0x60   : > { %2757 = vmatpush3.bf16.msra.mxu1 %v2708_v40  ;;  %2445 = vmatprep.mubr.msk.f32.mxu1 %vm2828_vm0, %v2829_v42  ;;  %v2082_v40 = vld [vmem:[%s3144_s12 + $0x190] sm:$0xff]  ;;  %v2088_v53 = vld [vmem:[%s3144_s12 + $0x1c0] sm:$0xff]  ;;  %v2089_v55 = vld [vmem:[%s3144_s12 + $0x1c8] sm:$0xff] }
  0x61   : > { %2742 = vmatprep.subr.bf16.mxu0 %v2827_v39  ;;  %2758 = vmatprep.subr.bf16.mxu1 %v2827_v39 }
  0x62   : > { %2351 = vmatmul.mubr.msk.f32.gmra.mrb[2].mxu0 %vm637_vm4, %v613_v56  ;;  %2446 = vmatmul.mubr.msk.f32.gmra.mrb[2].mxu1 %vm637_vm4, %v2032_v57  ;;  %v2140_v56 = vld [vmem:[%s3144_s12 + $0x290] sm:$0xff] }
  0x63   : > { %2353 = vmatprep.mubr.msk.f32.mxu0 %vm2828_vm0, %v2829_v42  ;;  %2448 = vmatprep.mubr.msk.f32.mxu1 %vm2828_vm0, %v2829_v42  ;;  %v2090_v57 = vld [vmem:[%s3144_s12 + $0x1d0] sm:$0xff] }
  0x64   : > { %2744 = vmatpush3.bf16.msra.mxu0 %v2711_v43  ;;  %2760 = vmatpush3.bf16.msra.mxu1 %v2711_v43  ;;  %v2083_v43 = vld [vmem:[%s3144_s12 + $0x198] sm:$0xff] }
  0x65   : > { %2745 = vmatprep.subr.bf16.mxu0 %v2827_v39  ;;  %2761 = vmatprep.subr.bf16.mxu1 %v2827_v39 }
  0x66   : > { %2354 = vmatmul.mubr.msk.f32.gmra.mrb[4].mxu0 %vm637_vm4, %v614_v58  ;;  %2449 = vmatmul.mubr.msk.f32.gmra.mrb[4].mxu1 %vm637_vm4, %v2033_v59  ;;  %v2141_v58 = vld [vmem:[%s3144_s12 + $0x298] sm:$0xff] }
  0x67   : > { %2356 = vmatprep.mubr.msk.f32.mxu0 %vm2828_vm0, %v2829_v42  ;;  %2451 = vmatprep.mubr.msk.f32.mxu1 %vm2828_vm0, %v2829_v42  ;;  %v2091_v59 = vld [vmem:[%s3144_s12 + $0x1d8] sm:$0xff] }
  0x68   : > { %2747 = vmatpush3.bf16.msra.mxu0 %v2714_v46  ;;  %2763 = vmatpush3.bf16.msra.mxu1 %v2714_v46  ;;  %v2135_v46 = vld [vmem:[%s3144_s12 + $0x268] sm:$0xff] }
  0x69   : > { %2748 = vmatprep.subr.bf16.mxu0 %v2827_v39  ;;  %2764 = vmatprep.subr.bf16.mxu1 %v2827_v39 }
  0x6a   : > { %2357 = vmatmul.mubr.msk.f32.gmra.mrb[6].mxu0 %vm637_vm4, %v615_v60  ;;  %2452 = vmatmul.mubr.msk.f32.gmra.mrb[6].mxu1 %vm637_vm4, %v2034_v61  ;;  %v2142_v60 = vld [vmem:[%s3144_s12 + $0x2a0] sm:$0xff] }
  0x6b   : > { %2359 = vmatprep.mubr.msk.f32.mxu0 %vm2828_vm0, %v2829_v42  ;;  %2454 = vmatprep.mubr.msk.f32.mxu1 %vm2828_vm0, %v2829_v42  ;;  %v2092_v61 = vld [vmem:[%s3144_s12 + $0x1e0] sm:$0xff] }
  0x6c   : > { %2750 = vmatpush3.bf16.msra.mxu0 %v2717_v49  ;;  %2766 = vmatpush3.bf16.msra.mxu1 %v2717_v49  ;;  %v2086_v49 = vld [vmem:[%s3144_s12 + $0x1b0] sm:$0xff] }
  0x6d   : > { %2751 = vmatprep.subr.bf16.mxu0 %v2827_v39  ;;  %2767 = vmatprep.subr.bf16.mxu1 %v2827_v39  ;;  %v2055_v39 = vld [vmem:[%s3144_s12 + $0x188] sm:$0xf] }
  0x6e   : > { %2360 = vmatmul.mubr.msk.f32.gmra.mrb[8].mxu0 %vm637_vm4, %v616_v62  ;;  %2455 = vmatmul.mubr.msk.f32.gmra.mrb[8].mxu1 %vm637_vm4, %v2035_v63  ;;  %v2143_v62 = vld [vmem:[%s3144_s12 + $0x2a8] sm:$0xff] }
  0x6f   : > { %2362 = vmatprep.mubr.msk.f32.mxu0 %vm2828_vm0, %v2829_v42  ;;  %2457 = vmatprep.mubr.msk.f32.mxu1 %vm2828_vm0, %v2829_v42  ;;  %v2093_v63 = vld [vmem:[%s3144_s12 + $0x1e8] sm:$0xff] }
  0x70   : > { %2754 = vmatpush3.bf16.msk.msra.mxu0 %vm3135_vm3, %v2720_v52  ;;  %2770 = vmatpush3.bf16.msk.msra.mxu1 %vm3135_vm3, %v2720_v52  ;;  %v2138_v52 = vld [vmem:[%s3144_s12 + $0x280] sm:$0xff] }
  0x72   : > { %2363 = vmatmul.mubr.msk.f32.gmra.mrb[10].mxu0 %vm637_vm4, %v617_v0  ;;  %2458 = vmatmul.mubr.msk.f32.gmra.mrb[10].mxu1 %vm637_vm4, %v2036_v1  ;;  %v2144_v0 = vld [vmem:[%s3144_s12 + $0x2b0] sm:$0xff] }
  0x73   : > { %2365 = vmatprep.mubr.msk.f32.mxu0 %vm2828_vm0, %v2829_v42  ;;  %2460 = vmatprep.mubr.msk.f32.mxu1 %vm2828_vm0, %v2829_v42  ;;  %v2094_v1 = vld [vmem:[%s3144_s12 + $0x1f0] sm:$0xff] }
  0x76   : > { %2366 = vmatmul.mubr.msk.f32.gmra.mrb[12].mxu0 %vm637_vm4, %v618_v2  ;;  %2461 = vmatmul.mubr.msk.f32.gmra.mrb[12].mxu1 %vm637_vm4, %v2037_v3  ;;  %v2145_v2 = vld [vmem:[%s3144_s12 + $0x2b8] sm:$0xff] }
  0x77   : > { %2368 = vmatprep.mubr.msk.f32.mxu0 %vm2828_vm0, %v2829_v42  ;;  %2463 = vmatprep.mubr.msk.f32.mxu1 %vm2828_vm0, %v2829_v42  ;;  %v2095_v3 = vld [vmem:[%s3144_s12 + $0x1f8] sm:$0xff] }
  0x7a   : > { %2369 = vmatmul.mubr.msk.f32.gmra.mrb[14].mxu0 %vm637_vm4, %v619_v4  ;;  %2464 = vmatmul.mubr.msk.f32.gmra.mrb[14].mxu1 %vm637_vm4, %v2038_v5  ;;  %v2146_v4 = vld [vmem:[%s3144_s12 + $0x2c0] sm:$0xff] }
  0x7b   : > { %2371 = vmatprep.mubr.msk.f32.mxu0 %vm2828_vm0, %v2829_v42  ;;  %2466 = vmatprep.mubr.msk.f32.mxu1 %vm2828_vm0, %v2829_v42  ;;  %v2096_v5 = vld [vmem:[%s3144_s12 + $0x200] sm:$0xff] }
  0x7e   : > { %2372 = vmatmul.mubr.msk.f32.gmra.mrb[16].mxu0 %vm637_vm4, %v620_v6  ;;  %2467 = vmatmul.mubr.msk.f32.gmra.mrb[16].mxu1 %vm637_vm4, %v2039_v7  ;;  %v2147_v6 = vld [vmem:[%s3144_s12 + $0x2c8] sm:$0xff] }
  0x7f   : > { %2374 = vmatprep.mubr.msk.f32.mxu0 %vm2828_vm0, %v2829_v42  ;;  %2469 = vmatprep.mubr.msk.f32.mxu1 %vm2828_vm0, %v2829_v42  ;;  %v2097_v7 = vld [vmem:[%s3144_s12 + $0x208] sm:$0xff] }
  0x82   : > { %2375 = vmatmul.mubr.msk.f32.gmra.mrb[18].mxu0 %vm637_vm4, %v621_v8  ;;  %2470 = vmatmul.mubr.msk.f32.gmra.mrb[18].mxu1 %vm637_vm4, %v2040_v9  ;;  %v2148_v8 = vld [vmem:[%s3144_s12 + $0x2d0] sm:$0xff] }
  0x83   : > { %2377 = vmatprep.mubr.msk.f32.mxu0 %vm2828_vm0, %v2829_v42  ;;  %2472 = vmatprep.mubr.msk.f32.mxu1 %vm2828_vm0, %v2829_v42  ;;  %v2098_v9 = vld [vmem:[%s3144_s12 + $0x210] sm:$0xff] }
  0x86   : > { %2378 = vmatmul.mubr.msk.f32.gmra.mrb[20].mxu0 %vm637_vm4, %v622_v10  ;;  %2473 = vmatmul.mubr.msk.f32.gmra.mrb[20].mxu1 %vm637_vm4, %v2041_v11  ;;  %v2149_v10 = vld [vmem:[%s3144_s12 + $0x2d8] sm:$0xff] }
  0x87   : > { %2380 = vmatprep.mubr.msk.f32.mxu0 %vm2828_vm0, %v2829_v42  ;;  %2475 = vmatprep.mubr.msk.f32.mxu1 %vm2828_vm0, %v2829_v42  ;;  %v2099_v11 = vld [vmem:[%s3144_s12 + $0x218] sm:$0xff] }
  0x8a   : > { %2381 = vmatmul.mubr.msk.f32.gmra.mrb[22].mxu0 %vm637_vm4, %v623_v12  ;;  %2476 = vmatmul.mubr.msk.f32.gmra.mrb[22].mxu1 %vm637_vm4, %v2042_v13  ;;  %v2150_v12 = vld [vmem:[%s3144_s12 + $0x2e0] sm:$0xff] }
  0x8b   : > { %2383 = vmatprep.mubr.msk.f32.mxu0 %vm2828_vm0, %v2829_v42  ;;  %2478 = vmatprep.mubr.msk.f32.mxu1 %vm2828_vm0, %v2829_v42  ;;  %v2100_v13 = vld [vmem:[%s3144_s12 + $0x220] sm:$0xff] }
  0x8e   : > { %2384 = vmatmul.mubr.msk.f32.gmra.mrb[24].mxu0 %vm637_vm4, %v624_v14  ;;  %2479 = vmatmul.mubr.msk.f32.gmra.mrb[24].mxu1 %vm637_vm4, %v2043_v15  ;;  %v2151_v14 = vld [vmem:[%s3144_s12 + $0x2e8] sm:$0xff] }
  0x8f   : > { %2386 = vmatprep.mubr.msk.f32.mxu0 %vm2828_vm0, %v2829_v42  ;;  %2481 = vmatprep.mubr.msk.f32.mxu1 %vm2828_vm0, %v2829_v42  ;;  %v2101_v15 = vld [vmem:[%s3144_s12 + $0x228] sm:$0xff] }
  0x92   : > { %2387 = vmatmul.mubr.msk.f32.gmra.mrb[26].mxu0 %vm637_vm4, %v625_v16  ;;  %2482 = vmatmul.mubr.msk.f32.gmra.mrb[26].mxu1 %vm637_vm4, %v2044_v17  ;;  %v2152_v16 = vld [vmem:[%s3144_s12 + $0x2f0] sm:$0xff] }
  0x93   : > { %2389 = vmatprep.mubr.msk.f32.mxu0 %vm2828_vm0, %v2829_v42  ;;  %2484 = vmatprep.mubr.msk.f32.mxu1 %vm2828_vm0, %v2829_v42  ;;  %v2102_v17 = vld [vmem:[%s3144_s12 + $0x230] sm:$0xff] }
  0x96   : > { %2390 = vmatmul.mubr.msk.f32.gmra.mrb[28].mxu0 %vm637_vm4, %v626_v18  ;;  %2485 = vmatmul.mubr.msk.f32.gmra.mrb[28].mxu1 %vm637_vm4, %v2045_v19  ;;  %v2153_v18 = vld [vmem:[%s3144_s12 + $0x2f8] sm:$0xff] }
  0x97   : > { %2392 = vmatprep.mubr.msk.f32.mxu0 %vm2828_vm0, %v2829_v42  ;;  %2487 = vmatprep.mubr.msk.f32.mxu1 %vm2828_vm0, %v2829_v42  ;;  %v2103_v19 = vld [vmem:[%s3144_s12 + $0x238] sm:$0xff] }
  0x9a   : > { %2393 = vmatmul.mubr.msk.f32.gmra.mrb[30].mxu0 %vm637_vm4, %v627_v20  ;;  %2488 = vmatmul.mubr.msk.f32.gmra.mrb[30].mxu1 %vm637_vm4, %v2046_v21  ;;  %v2154_v20 = vld [vmem:[%s3144_s12 + $0x300] sm:$0xff] }
  0x9b   : > { %2395 = vmatprep.mubr.msk.f32.mxu0 %vm2828_vm0, %v2829_v42  ;;  %2490 = vmatprep.mubr.msk.f32.mxu1 %vm2828_vm0, %v2829_v42  ;;  %v2104_v21 = vld [vmem:[%s3144_s12 + $0x240] sm:$0xff] }
  0x9e   : > { %2396 = vmatmul.mubr.msk.f32.gmra.mrb[32].mxu0 %vm637_vm4, %v628_v22  ;;  %2491 = vmatmul.mubr.msk.f32.gmra.mrb[32].mxu1 %vm637_vm4, %v2047_v23  ;;  %v2155_v22 = vld [vmem:[%s3144_s12 + $0x308] sm:$0xff] }
  0x9f   : > { %2398 = vmatprep.mubr.msk.f32.mxu0 %vm2828_vm0, %v2829_v42  ;;  %2493 = vmatprep.mubr.msk.f32.mxu1 %vm2828_vm0, %v2829_v42  ;;  %v2105_v23 = vld [vmem:[%s3144_s12 + $0x248] sm:$0xff] }
  0xa2   : > { %2399 = vmatmul.mubr.msk.f32.gmra.mrb[34].mxu0 %vm637_vm4, %v629_v24  ;;  %2494 = vmatmul.mubr.msk.f32.gmra.mrb[34].mxu1 %vm637_vm4, %v2048_v25  ;;  %v2156_v24 = vld [vmem:[%s3144_s12 + $0x310] sm:$0xff] }
  0xa3   : > { %2401 = vmatprep.mubr.msk.f32.mxu0 %vm2828_vm0, %v2829_v42  ;;  %2496 = vmatprep.mubr.msk.f32.mxu1 %vm2828_vm0, %v2829_v42  ;;  %v2106_v25 = vld [vmem:[%s3144_s12 + $0x250] sm:$0xf] }
  0xa6   : > { %2402 = vmatmul.mubr.msk.f32.gmra.mrb[36].mxu0 %vm637_vm4, %v630_v26  ;;  %2497 = vmatmul.mubr.msk.f32.gmra.mrb[36].mxu1 %vm637_vm4, %v2049_v27  ;;  %v2157_v26 = vld [vmem:[%s3144_s12 + $0x318] sm:$0xf] }
  0xa7   : > { %2404 = vmatprep.mubr.msk.f32.mxu0 %vm2828_vm0, %v2829_v42  ;;  %2499 = vmatprep.mubr.msk.f32.mxu1 %vm2828_vm0, %v2829_v42 }
  0xaa   : > { %2405 = vmatmul.mubr.msk.f32.gmra.mrb[38].mxu0 %vm637_vm4, %v631_v28  ;;  %2500 = vmatmul.mubr.msk.f32.gmra.mrb[38].mxu1 %vm637_vm4, %v2050_v29 }
  0xab   : > { %2407 = vmatprep.mubr.msk.f32.mxu0 %vm2828_vm0, %v2829_v42  ;;  %2502 = vmatprep.mubr.msk.f32.mxu1 %vm2828_vm0, %v2829_v42 }
  0xae   : > { %2408 = vmatmul.mubr.msk.f32.gmra.mrb[40].mxu0 %vm637_vm4, %v632_v30  ;;  %2503 = vmatmul.mubr.msk.f32.gmra.mrb[40].mxu1 %vm637_vm4, %v2051_v31 }
  0xaf   : > { %2410 = vmatprep.mubr.msk.f32.mxu0 %vm2828_vm0, %v2829_v42  ;;  %2505 = vmatprep.mubr.msk.f32.mxu1 %vm2828_vm0, %v2829_v42 }
  0xb2   : > { %2411 = vmatmul.mubr.msk.f32.gmra.mrb[42].mxu0 %vm637_vm4, %v633_v32  ;;  %2506 = vmatmul.mubr.msk.f32.gmra.mrb[42].mxu1 %vm637_vm4, %v2052_v33 }
  0xb3   : > { %2413 = vmatprep.mubr.msk.f32.mxu0 %vm2828_vm0, %v2829_v42  ;;  %2508 = vmatprep.mubr.msk.f32.mxu1 %vm2828_vm0, %v2829_v42 }
  0xb6   : > { %2414 = vmatmul.mubr.msk.f32.gmra.mrb[44].mxu0 %vm637_vm4, %v634_v34  ;;  %2509 = vmatmul.mubr.msk.f32.gmra.mrb[44].mxu1 %vm637_vm4, %v2053_v35 }
  0xb7   : > { %2416 = vmatprep.mubr.msk.f32.mxu0 %vm2828_vm0, %v2829_v42  ;;  %2511 = vmatprep.mubr.msk.f32.mxu1 %vm2828_vm0, %v2829_v42 }
  0xba   : > { %2417 = vmatmul.mubr.msk.f32.gmra.mrb[46].mxu0 %vm637_vm4, %v635_v36  ;;  %2512 = vmatmul.mubr.msk.f32.gmra.mrb[46].mxu1 %vm637_vm4, %v2054_v37 }
  0xbb   : > { %2419 = vmatprep.mubr.msk.f32.mxu0 %vm2828_vm0, %v2829_v42  ;;  %2514 = vmatprep.mubr.msk.f32.mxu1 %vm2828_vm0, %v2829_v42 }
  0xbe   : > { %2420 = vmatmul.mubr.msk.f32.gmra.mrb[48].mxu0 %vm637_vm4, %v636_v38  ;;  %2515 = vmatmul.mubr.msk.f32.gmra.mrb[48].mxu1 %vm637_vm4, %v2055_v39 }
  0xbf   : > { %2537 = vmatprep.mubr.msk.f32.mxu0 %vm2828_vm0, %v2829_v42  ;;  %2632 = vmatprep.mubr.msk.f32.mxu1 %vm2828_vm0, %v2829_v42 }
  0xc2   : > { %2538 = vmatmul.mubr.msk.f32.vlgmr.msra.gmra.mrb[50].mxu0 %vm637_vm4, %v2082_v40  ;;  %2633 = vmatmul.mubr.msk.f32.vlgmr.msra.gmra.mrb[50].mxu1 %vm637_vm4, %v2133_v41 }
  0xc3   : > { %2540 = vmatprep.mubr.msk.f32.mxu0 %vm2828_vm0, %v2829_v42  ;;  %2635 = vmatprep.mubr.msk.f32.mxu1 %vm2828_vm0, %v2829_v42 }
  0xc6   : > { %2541 = vmatmul.mubr.msk.f32.gmra.mrb[52].mxu0 %vm637_vm4, %v2083_v43  ;;  %2636 = vmatmul.mubr.msk.f32.gmra.mrb[52].mxu1 %vm637_vm4, %v2134_v44 }
  0xc7   : > { %2543 = vmatprep.mubr.msk.f32.mxu0 %vm2828_vm0, %v2829_v42  ;;  %2638 = vmatprep.mubr.msk.f32.mxu1 %vm2828_vm0, %v2829_v42 }
  0xca   : > { %2544 = vmatmul.mubr.msk.f32.gmra.mrb[54].mxu0 %vm637_vm4, %v2084_v45  ;;  %2639 = vmatmul.mubr.msk.f32.gmra.mrb[54].mxu1 %vm637_vm4, %v2135_v46 }
  0xcb   : > { %2546 = vmatprep.mubr.msk.f32.mxu0 %vm2828_vm0, %v2829_v42  ;;  %2641 = vmatprep.mubr.msk.f32.mxu1 %vm2828_vm0, %v2829_v42 }
  0xce   : > { %2547 = vmatmul.mubr.msk.f32.gmra.mrb[56].mxu0 %vm637_vm4, %v2085_v47  ;;  %2642 = vmatmul.mubr.msk.f32.gmra.mrb[56].mxu1 %vm637_vm4, %v2136_v48 }
  0xcf   : > { %2549 = vmatprep.mubr.msk.f32.mxu0 %vm2828_vm0, %v2829_v42  ;;  %2644 = vmatprep.mubr.msk.f32.mxu1 %vm2828_vm0, %v2829_v42 }
  0xd2   : > { %2550 = vmatmul.mubr.msk.f32.gmra.mrb[58].mxu0 %vm637_vm4, %v2086_v49  ;;  %2645 = vmatmul.mubr.msk.f32.gmra.mrb[58].mxu1 %vm637_vm4, %v2137_v50 }
  0xd3   : > { %2552 = vmatprep.mubr.msk.f32.mxu0 %vm2828_vm0, %v2829_v42  ;;  %2647 = vmatprep.mubr.msk.f32.mxu1 %vm2828_vm0, %v2829_v42 }
  0xd6   : > { %2553 = vmatmul.mubr.msk.f32.gmra.mrb[60].mxu0 %vm637_vm4, %v2087_v51  ;;  %2648 = vmatmul.mubr.msk.f32.gmra.mrb[60].mxu1 %vm637_vm4, %v2138_v52 }
  0xd7   : > { %2555 = vmatprep.mubr.msk.f32.mxu0 %vm2828_vm0, %v2829_v42  ;;  %2650 = vmatprep.mubr.msk.f32.mxu1 %vm2828_vm0, %v2829_v42 }
  0xda   : > { %2556 = vmatmul.mubr.msk.f32.gmra.mrb[62].mxu0 %vm637_vm4, %v2088_v53  ;;  %2651 = vmatmul.mubr.msk.f32.gmra.mrb[62].mxu1 %vm637_vm4, %v2139_v54 }
  0xdb   : > { %2558 = vmatprep.mubr.msk.f32.mxu0 %vm2828_vm0, %v2829_v42  ;;  %2653 = vmatprep.mubr.msk.f32.mxu1 %vm2828_vm0, %v2829_v42 }
  0xde   : > { %2559 = vmatmul.mubr.msk.f32.gmra.mrb[64].mxu0 %vm637_vm4, %v2089_v55  ;;  %2654 = vmatmul.mubr.msk.f32.gmra.mrb[64].mxu1 %vm637_vm4, %v2140_v56  ;;  %v3716_v55 = vld [vmem:[%s3857_s2] ss:$0 sm:$0xff] }
  0xdf   : > { %2561 = vmatprep.mubr.msk.f32.mxu0 %vm2828_vm0, %v2829_v42  ;;  %2656 = vmatprep.mubr.msk.f32.mxu1 %vm2828_vm0, %v2829_v42 }
  0xe2   : > { %2562 = vmatmul.mubr.msk.f32.gmra.mrb[66].mxu0 %vm637_vm4, %v2090_v57  ;;  %2657 = vmatmul.mubr.msk.f32.gmra.mrb[66].mxu1 %vm637_vm4, %v2141_v58 }
  0xe3   : > { %2564 = vmatprep.mubr.msk.f32.mxu0 %vm2828_vm0, %v2829_v42  ;;  %2659 = vmatprep.mubr.msk.f32.mxu1 %vm2828_vm0, %v2829_v42 }
  0xe6   : > { %2565 = vmatmul.mubr.msk.f32.gmra.mrb[68].mxu0 %vm637_vm4, %v2091_v59  ;;  %2660 = vmatmul.mubr.msk.f32.gmra.mrb[68].mxu1 %vm637_vm4, %v2142_v60 }
  0xe7   : > { %2567 = vmatprep.mubr.msk.f32.mxu0 %vm2828_vm0, %v2829_v42  ;;  %2662 = vmatprep.mubr.msk.f32.mxu1 %vm2828_vm0, %v2829_v42 }
  0xea   : > { %2568 = vmatmul.mubr.msk.f32.gmra.mrb[70].mxu0 %vm637_vm4, %v2092_v61  ;;  %2663 = vmatmul.mubr.msk.f32.gmra.mrb[70].mxu1 %vm637_vm4, %v2143_v62 }
  0xeb   : > { %2570 = vmatprep.mubr.msk.f32.mxu0 %vm2828_vm0, %v2829_v42  ;;  %2665 = vmatprep.mubr.msk.f32.mxu1 %vm2828_vm0, %v2829_v42 }
  0xee   : > { %2571 = vmatmul.mubr.msk.f32.gmra.mrb[72].mxu0 %vm637_vm4, %v2093_v63  ;;  %2666 = vmatmul.mubr.msk.f32.gmra.mrb[72].mxu1 %vm637_vm4, %v2144_v0 }
  0xef   : > { %2573 = vmatprep.mubr.msk.f32.mxu0 %vm2828_vm0, %v2829_v42  ;;  %2668 = vmatprep.mubr.msk.f32.mxu1 %vm2828_vm0, %v2829_v42 }
  0xf2   : > { %2574 = vmatmul.mubr.msk.f32.gmra.mrb[74].mxu0 %vm637_vm4, %v2094_v1  ;;  %2669 = vmatmul.mubr.msk.f32.gmra.mrb[74].mxu1 %vm637_vm4, %v2145_v2 }
  0xf3   : > { %2576 = vmatprep.mubr.msk.f32.mxu0 %vm2828_vm0, %v2829_v42  ;;  %2671 = vmatprep.mubr.msk.f32.mxu1 %vm2828_vm0, %v2829_v42 }
  0xf6   : > { %2577 = vmatmul.mubr.msk.f32.gmra.mrb[76].mxu0 %vm637_vm4, %v2095_v3  ;;  %2672 = vmatmul.mubr.msk.f32.gmra.mrb[76].mxu1 %vm637_vm4, %v2146_v4 }
  0xf7   : > { %2579 = vmatprep.mubr.msk.f32.mxu0 %vm2828_vm0, %v2829_v42  ;;  %2674 = vmatprep.mubr.msk.f32.mxu1 %vm2828_vm0, %v2829_v42 }
  0xfa   : > { %2580 = vmatmul.mubr.msk.f32.gmra.mrb[78].mxu0 %vm637_vm4, %v2096_v5  ;;  %2675 = vmatmul.mubr.msk.f32.gmra.mrb[78].mxu1 %vm637_vm4, %v2147_v6 }
  0xfb   : > { %2582 = vmatprep.mubr.msk.f32.mxu0 %vm2828_vm0, %v2829_v42  ;;  %2677 = vmatprep.mubr.msk.f32.mxu1 %vm2828_vm0, %v2829_v42 }
  0xfe   : > { %2583 = vmatmul.mubr.msk.f32.gmra.mrb[80].mxu0 %vm637_vm4, %v2097_v7  ;;  %2678 = vmatmul.mubr.msk.f32.gmra.mrb[80].mxu1 %vm637_vm4, %v2148_v8 }
  0xff   : > { %2585 = vmatprep.mubr.msk.f32.mxu0 %vm2828_vm0, %v2829_v42  ;;  %2680 = vmatprep.mubr.msk.f32.mxu1 %vm2828_vm0, %v2829_v42 }
 0x102   : > { %2586 = vmatmul.mubr.msk.f32.gmra.mrb[82].mxu0 %vm637_vm4, %v2098_v9  ;;  %2681 = vmatmul.mubr.msk.f32.gmra.mrb[82].mxu1 %vm637_vm4, %v2149_v10 }
 0x103   : > { %2588 = vmatprep.mubr.msk.f32.mxu0 %vm2828_vm0, %v2829_v42  ;;  %2683 = vmatprep.mubr.msk.f32.mxu1 %vm2828_vm0, %v2829_v42 }
 0x106   : > { %2589 = vmatmul.mubr.msk.f32.gmra.mrb[84].mxu0 %vm637_vm4, %v2099_v11  ;;  %2684 = vmatmul.mubr.msk.f32.gmra.mrb[84].mxu1 %vm637_vm4, %v2150_v12 }
 0x107   : > { %2591 = vmatprep.mubr.msk.f32.mxu0 %vm2828_vm0, %v2829_v42  ;;  %2686 = vmatprep.mubr.msk.f32.mxu1 %vm2828_vm0, %v2829_v42 }
 0x10a   : > { %2592 = vmatmul.mubr.msk.f32.gmra.mrb[86].mxu0 %vm637_vm4, %v2100_v13  ;;  %2687 = vmatmul.mubr.msk.f32.gmra.mrb[86].mxu1 %vm637_vm4, %v2151_v14 }
 0x10b   : > { %2594 = vmatprep.mubr.msk.f32.mxu0 %vm2828_vm0, %v2829_v42  ;;  %2689 = vmatprep.mubr.msk.f32.mxu1 %vm2828_vm0, %v2829_v42 }
 0x10e   : > { %2595 = vmatmul.mubr.msk.f32.gmra.mrb[88].mxu0 %vm637_vm4, %v2101_v15  ;;  %2690 = vmatmul.mubr.msk.f32.gmra.mrb[88].mxu1 %vm637_vm4, %v2152_v16 }
 0x10f   : > { %2597 = vmatprep.mubr.msk.f32.mxu0 %vm2828_vm0, %v2829_v42  ;;  %2692 = vmatprep.mubr.msk.f32.mxu1 %vm2828_vm0, %v2829_v42 }
 0x112   : > { %2598 = vmatmul.mubr.msk.f32.gmra.mrb[90].mxu0 %vm637_vm4, %v2102_v17  ;;  %2693 = vmatmul.mubr.msk.f32.gmra.mrb[90].mxu1 %vm637_vm4, %v2153_v18 }
 0x113   : > { %2600 = vmatprep.mubr.msk.f32.mxu0 %vm2828_vm0, %v2829_v42  ;;  %2695 = vmatprep.mubr.msk.f32.mxu1 %vm2828_vm0, %v2829_v42 }
 0x116   : > { %2601 = vmatmul.mubr.msk.f32.gmra.mrb[92].mxu0 %vm637_vm4, %v2103_v19  ;;  %2696 = vmatmul.mubr.msk.f32.gmra.mrb[92].mxu1 %vm637_vm4, %v2154_v20 }
 0x117   : > { %2603 = vmatprep.mubr.msk.f32.mxu0 %vm2828_vm0, %v2829_v42  ;;  %2698 = vmatprep.mubr.msk.f32.mxu1 %vm2828_vm0, %v2829_v42 }
 0x11a   : > { %2604 = vmatmul.mubr.msk.f32.gmra.mrb[94].mxu0 %vm637_vm4, %v2104_v21  ;;  %2699 = vmatmul.mubr.msk.f32.gmra.mrb[94].mxu1 %vm637_vm4, %v2155_v22 }
 0x11b   : > { %2606 = vmatprep.mubr.msk.f32.mxu0 %vm2828_vm0, %v2829_v42  ;;  %2701 = vmatprep.mubr.msk.f32.mxu1 %vm2828_vm0, %v2829_v42 }
 0x11e   : > { %2607 = vmatmul.mubr.msk.f32.gmra.mrb[96].mxu0 %vm637_vm4, %v2105_v23  ;;  %2702 = vmatmul.mubr.msk.f32.gmra.mrb[96].mxu1 %vm637_vm4, %v2156_v24 }
 0x11f   : > { %2609 = vmatprep.mubr.msk.f32.mxu0 %vm2828_vm0, %v2829_v42  ;;  %2704 = vmatprep.mubr.msk.f32.mxu1 %vm2828_vm0, %v2829_v42 }
 0x122   : > { %2610 = vmatmul.mubr.msk.f32.gmra.mrb[98].mxu0 %vm637_vm4, %v2106_v25  ;;  %2705 = vmatmul.mubr.msk.f32.gmra.mrb[98].mxu1 %vm637_vm4, %v2157_v26 }
 0x131   : > { %v3556_v27 = vpop.f32.mrb[0].mxu0  ;;  %v3558_v28 = vpop.f32.mrb[0].mxu1 }
 0x132   : > { %v2349_v29 = vpop.f32.mrb[1].mxu0  ;;  %v1198_v30 = vmax.f32 %v3556_v27, %v3558_v28  ;;  %v2444_v31 = vpop.f32.mrb[1].mxu1 }
 0x135   : > { %v3562_v32 = vpop.f32.mrb[2].mxu0  ;;  %v3564_v33 = vpop.f32.mrb[2].mxu1 }
 0x136   : > { %v2352_v34 = vpop.f32.mrb[3].mxu0  ;;  %v1199_v42 = vmax.f32 %v3562_v32, %v3564_v33  ;;  %v2447_v35 = vpop.f32.mrb[3].mxu1 }
 0x139   : > { %v3568_v36 = vpop.f32.mrb[4].mxu0  ;;  %v3570_v37 = vpop.f32.mrb[4].mxu1 }
 0x13a   : > { %v2355_v38 = vpop.f32.mrb[5].mxu0  ;;  %v2450_v40 = vpop.f32.mrb[5].mxu1  ;;  %v3861_v32 = vmax.f32 %v3568_v36, %v3570_v37 }
 0x13d   : > { %v3574_v41 = vpop.f32.mrb[6].mxu0  ;;  %v3576_v43 = vpop.f32.mrb[6].mxu1 }
 0x13e   : > { %v2358_v44 = vpop.f32.mrb[7].mxu0  ;;  %v2453_v46 = vpop.f32.mrb[7].mxu1 }
 0x141   : > { %v3580_v47 = vpop.f32.mrb[8].mxu0  ;;  %v3582_v48 = vpop.f32.mrb[8].mxu1 }
 0x142   : > { %v2361_v49 = vpop.f32.mrb[9].mxu0  ;;  %v2456_v51 = vpop.f32.mrb[9].mxu1 }
 0x145   : > { %v3586_v52 = vpop.f32.mrb[10].mxu0  ;;  %v3588_v53 = vpop.f32.mrb[10].mxu1 }
 0x146   : > { %v2364_v54 = vpop.f32.mrb[11].mxu0  ;;  %v2459_v56 = vpop.f32.mrb[11].mxu1 }
 0x149   : > { %v3592_v57 = vpop.f32.mrb[12].mxu0  ;;  %v3594_v58 = vpop.f32.mrb[12].mxu1 }
 0x14a   : > { %v2367_v59 = vpop.f32.mrb[13].mxu0  ;;  %v2462_v61 = vpop.f32.mrb[13].mxu1 }
 0x14d   : > { %v3598_v62 = vpop.f32.mrb[14].mxu0  ;;  %v3600_v63 = vpop.f32.mrb[14].mxu1 }
 0x14e   : > { %v2370_v0 = vpop.f32.mrb[15].mxu0  ;;  %v2465_v2 = vpop.f32.mrb[15].mxu1 }
 0x151   : > { %v3604_v3 = vpop.f32.mrb[16].mxu0  ;;  %v3606_v4 = vpop.f32.mrb[16].mxu1 }
 0x152   : > { %v2373_v5 = vpop.f32.mrb[17].mxu0  ;;  %v2468_v7 = vpop.f32.mrb[17].mxu1 }
 0x155   : > { %v3610_v8 = vpop.f32.mrb[18].mxu0  ;;  %v3612_v9 = vpop.f32.mrb[18].mxu1 }
 0x156   : > { %v2376_v10 = vpop.f32.mrb[19].mxu0  ;;  %v2471_v12 = vpop.f32.mrb[19].mxu1 }
 0x159   : > { %v3616_v13 = vpop.f32.mrb[20].mxu0  ;;  %v3618_v14 = vpop.f32.mrb[20].mxu1 }
 0x15a   : > { %v2379_v15 = vpop.f32.mrb[21].mxu0  ;;  %v2474_v17 = vpop.f32.mrb[21].mxu1 }
 0x15d   : > { %v3622_v18 = vpop.f32.mrb[22].mxu0  ;;  %v3624_v19 = vpop.f32.mrb[22].mxu1 }
 0x15e   : > { %v2382_v20 = vpop.f32.mrb[23].mxu0  ;;  %v2477_v22 = vpop.f32.mrb[23].mxu1 }
 0x161   : > { %v3628_v23 = vpop.f32.mrb[24].mxu0  ;;  %v3630_v24 = vpop.f32.mrb[24].mxu1 }
 0x162   : > { %v2385_v25 = vpop.f32.mrb[25].mxu0  ;;  %v2480_v29 = vpop.f32.mrb[25].mxu1 }
 0x165   : > { %v3634_v31 = vpop.f32.mrb[26].mxu0  ;;  %v3636_v34 = vpop.f32.mrb[26].mxu1 }
 0x166   : > { %v2388_v35 = vpop.f32.mrb[27].mxu0  ;;  %v2483_v40 = vpop.f32.mrb[27].mxu1 }
 0x169   : > { %v3640_v44 = vpop.f32.mrb[28].mxu0  ;;  %v3642_v46 = vpop.f32.mrb[28].mxu1 }
 0x16a   : > { %v2391_v49 = vpop.f32.mrb[29].mxu0  ;;  %v2486_v54 = vpop.f32.mrb[29].mxu1 }
 0x16d   : > { %v3646_v56 = vpop.f32.mrb[30].mxu0  ;;  %v3648_v59 = vpop.f32.mrb[30].mxu1 }
 0x16e   : > { %v2394_v61 = vpop.f32.mrb[31].mxu0  ;;  %v2489_v2 = vpop.f32.mrb[31].mxu1 }
 0x171   : > { %v3652_v5 = vpop.f32.mrb[32].mxu0  ;;  %v3654_v7 = vpop.f32.mrb[32].mxu1 }
 0x172   : > { %v2397_v10 = vpop.f32.mrb[33].mxu0  ;;  %v2492_v15 = vpop.f32.mrb[33].mxu1 }
 0x175   : > { %v3658_v17 = vpop.f32.mrb[34].mxu0  ;;  %v3660_v20 = vpop.f32.mrb[34].mxu1 }
 0x176   : > { %v2400_v22 = vpop.f32.mrb[35].mxu0  ;;  %v2495_v29 = vpop.f32.mrb[35].mxu1 }
 0x179   : > { %v3664_v35 = vpop.f32.mrb[36].mxu0  ;;  %v3666_v40 = vpop.f32.mrb[36].mxu1 }
 0x17a   : > { %v2403_v49 = vpop.f32.mrb[37].mxu0  ;;  %v2498_v61 = vpop.f32.mrb[37].mxu1 }
 0x17d   : > { %v3670_v2 = vpop.f32.mrb[38].mxu0  ;;  %v3672_v10 = vpop.f32.mrb[38].mxu1 }
 0x17e   : > { %v2406_v15 = vpop.f32.mrb[39].mxu0  ;;  %v2501_v12 = vpop.f32.mrb[39].mxu1 }
 0x181   : > { %v3676_v25 = vpop.f32.mrb[40].mxu0  ;;  %v3678_v29 = vpop.f32.mrb[40].mxu1 }
 0x182   : > { %v2409_v0 = vpop.f32.mrb[41].mxu0  ;;  %v2504_v51 = vpop.f32.mrb[41].mxu1 }
 0x185   : > { %v3682_v61 = vpop.f32.mrb[42].mxu0  ;;  %v3684_v54 = vpop.f32.mrb[42].mxu1 }
 0x186   : > { %v2412_v38 = vpop.f32.mrb[43].mxu0  ;;  %v2507_v22 = vpop.f32.mrb[43].mxu1 }
 0x189   : > { %v3688_v12 = vpop.f32.mrb[44].mxu0  ;;  %v3690_v26 = vpop.f32.mrb[44].mxu1 }
 0x18a   : > { %v2415_v0 = vpop.f32.mrb[45].mxu0  ;;  %v2510_v51 = vpop.f32.mrb[45].mxu1 }
 0x18d   : > { %v3694_v21 = vpop.f32.mrb[46].mxu0  ;;  %v3696_v16 = vpop.f32.mrb[46].mxu1 }
 0x18e   : > { %v2418_v11 = vpop.f32.mrb[47].mxu0  ;;  %v2513_v15 = vpop.f32.mrb[47].mxu1 }
 0x191   : > { %v3702_v22 = vpop.f32.mrb[48].mxu0  ;;  %v3704_v6 = vpop.f32.mrb[48].mxu1 }
 0x192   : > { %v2421_v0 = vpop.f32.mrb[49].mxu0  ;;  %v2516_v51 = vpop.f32.mrb[49].mxu1 }
 0x195   : > { %v1390_v1 = vpop.f32.mrb[50].mxu0  ;;  %v1706_v60 = vpop.f32.mrb[50].mxu1 }
 0x196   : > { %v1514_v11 = vmax.f32 %v1198_v30, %v1390_v1  ;;  %v2539_v15 = vpop.f32.mrb[51].mxu0  ;;  %v2634_v38 = vpop.f32.mrb[51].mxu1 }
 0x198   : > { %v1830_v0 = vmax.f32 %v1514_v11, %v1706_v60 }
 0x199   : > { %v1395_v50 = vpop.f32.mrb[52].mxu0  ;;  %v1711_v49 = vpop.f32.mrb[52].mxu1 }
 0x19a   : > { %v1862_v51 = vadd.f32 %v3716_v55, %v1830_v0  ;;  %v1515_v45 = vmax.f32 %v1199_v42, %v1395_v50  ;;  %v2542_v39 = vpop.f32.mrb[53].mxu0  ;;  %v2637_v27 = vpop.f32.mrb[53].mxu1 }
 0x19c   : > { %v1887_v28 = vmax.f32 %v1862_v51, 0.0  ;;  %v1831_v30 = vmax.f32 %v1515_v45, %v1711_v49  ;;  %v3862_v45 = vmax.f32 %v3574_v41, %v3576_v43 }
 0x19d   : > { %v1400_v60 = vpop.f32.mrb[54].mxu0  ;;  %v1716_v1 = vpop.f32.mrb[54].mxu1 }
 0x19e   : > { %1912 = vst [vmem:[%s3725_s15] sm:$0xff] %v1887_v28  ;;  %v1863_v38 = vadd.f32 %v3716_v55, %v1831_v30  ;;  %v1516_v33 = vmax.f32 %v3861_v32, %v1400_v60  ;;  %v2545_v42 = vpop.f32.mrb[55].mxu0  ;;  %v2640_v39 = vpop.f32.mrb[55].mxu1 }
 0x1a0   : > { %v1888_v50 = vmax.f32 %v1863_v38, 0.0  ;;  %v1832_v11 = vmax.f32 %v1516_v33, %v1716_v1  ;;  %v3863_v1 = vmax.f32 %v3580_v47, %v3582_v48 }
 0x1a1   : > { %v1405_v15 = vpop.f32.mrb[56].mxu0  ;;  %v1721_v0 = vpop.f32.mrb[56].mxu1 }
 0x1a2   : > { %1913 = vst [vmem:[%s3725_s15 + $0x8] sm:$0xff] %v1888_v50  ;;  %v1864_v51 = vadd.f32 %v3716_v55, %v1832_v11  ;;  %v1517_v49 = vmax.f32 %v3862_v45, %v1405_v15  ;;  %v2548_v27 = vpop.f32.mrb[57].mxu0  ;;  %v2643_v28 = vpop.f32.mrb[57].mxu1  ;;  %v3864_v15 = vmax.f32 %v3586_v52, %v3588_v53 }
 0x1a4   : > { %v1889_v30 = vmax.f32 %v1864_v51, 0.0  ;;  %v1833_v36 = vmax.f32 %v1517_v49, %v1721_v0 }
 0x1a5   : > { %v1410_v37 = vpop.f32.mrb[58].mxu0  ;;  %v1726_v60 = vpop.f32.mrb[58].mxu1 }
 0x1a6   : > { %1914 = vst [vmem:[%s3725_s15 + $0x10] sm:$0xff] %v1889_v30  ;;  %v1865_v38 = vadd.f32 %v3716_v55, %v1833_v36  ;;  %v1518_v32 = vmax.f32 %v3863_v1, %v1410_v37  ;;  %v2551_v33 = vpop.f32.mrb[59].mxu0  ;;  %v2646_v42 = vpop.f32.mrb[59].mxu1  ;;  %v3865_v30 = vmax.f32 %v3592_v57, %v3594_v58 }
 0x1a7   : > { %v3866_v33 = vmax.f32 %v3598_v62, %v3600_v63 }
 0x1a8   : > { %v1890_v39 = vmax.f32 %v1865_v38, 0.0  ;;  %v1834_v41 = vmax.f32 %v1518_v32, %v1726_v60 }
 0x1a9   : > { %v1415_v43 = vpop.f32.mrb[60].mxu0  ;;  %v1731_v50 = vpop.f32.mrb[60].mxu1 }
 0x1aa   : > { %1915 = vst [vmem:[%s3725_s15 + $0x18] sm:$0xff] %v1890_v39  ;;  %v1866_v11 = vadd.f32 %v3716_v55, %v1834_v41  ;;  %v1519_v0 = vmax.f32 %v3864_v15, %v1415_v43  ;;  %v2554_v51 = vpop.f32.mrb[61].mxu0  ;;  %v2649_v45 = vpop.f32.mrb[61].mxu1  ;;  %v3867_v15 = vmax.f32 %v3604_v3, %v3606_v4 }
 0x1ac   : > { %v1891_v49 = vmax.f32 %v1866_v11, 0.0  ;;  %v1835_v47 = vmax.f32 %v1519_v0, %v1731_v50 }
 0x1ad   : > { %v1420_v48 = vpop.f32.mrb[62].mxu0  ;;  %v1736_v27 = vpop.f32.mrb[62].mxu1 }
 0x1ae   : > { %1916 = vst [vmem:[%s3725_s15 + $0x20] sm:$0xff] %v1891_v49  ;;  %v1867_v28 = vadd.f32 %v3716_v55, %v1835_v47  ;;  %v1520_v36 = vmax.f32 %v3865_v30, %v1420_v48  ;;  %v2557_v37 = vpop.f32.mrb[63].mxu0  ;;  %v2652_v60 = vpop.f32.mrb[63].mxu1 }
 0x1b0   : > { %v1892_v38 = vmax.f32 %v1867_v28, 0.0  ;;  %v1836_v52 = vmax.f32 %v1520_v36, %v1736_v27  ;;  %v3868_v27 = vmax.f32 %v3610_v8, %v3612_v9 }
 0x1b1   : > { %v1425_v53 = vpop.f32.mrb[64].mxu0  ;;  %v1741_v1 = vpop.f32.mrb[64].mxu1 }
 0x1b2   : > { %1917 = vst [vmem:[%s3725_s15 + $0x28] sm:$0xff] %v1892_v38  ;;  %v1868_v32 = vadd.f32 %v3716_v55, %v1836_v52  ;;  %v1521_v42 = vmax.f32 %v3866_v33, %v1425_v53  ;;  %v2560_v39 = vpop.f32.mrb[65].mxu0  ;;  %v2655_v41 = vpop.f32.mrb[65].mxu1  ;;  %v3869_v52 = vmax.f32 %v3616_v13, %v3618_v14 }
 0x1b3   : > { %v3870_v41 = vmax.f32 %v3622_v18, %v3624_v19 }
 0x1b4   : > { %v1893_v43 = vmax.f32 %v1868_v32, 0.0  ;;  %v1837_v57 = vmax.f32 %v1521_v42, %v1741_v1 }
 0x1b5   : > { %v1430_v58 = vpop.f32.mrb[66].mxu0  ;;  %v1746_v50 = vpop.f32.mrb[66].mxu1 }
 0x1b6   : > { %1918 = vst [vmem:[%s3725_s15 + $0x30] sm:$0xff] %v1893_v43  ;;  %v1869_v11 = vadd.f32 %v3716_v55, %v1837_v57  ;;  %v1522_v0 = vmax.f32 %v3867_v15, %v1430_v58  ;;  %v2563_v51 = vpop.f32.mrb[67].mxu0  ;;  %v2658_v45 = vpop.f32.mrb[67].mxu1 }
 0x1b8   : > { %v1894_v49 = vmax.f32 %v1869_v11, 0.0  ;;  %v1838_v62 = vmax.f32 %v1522_v0, %v1746_v50  ;;  %v3871_v0 = vmax.f32 %v3628_v23, %v3630_v24 }
 0x1b9   : > { %v1435_v63 = vpop.f32.mrb[68].mxu0  ;;  %v1751_v47 = vpop.f32.mrb[68].mxu1 }
 0x1ba   : > { %1919 = vst [vmem:[%s3725_s15 + $0x38] sm:$0xff] %v1894_v49  ;;  %v1870_v48 = vadd.f32 %v3716_v55, %v1838_v62  ;;  %v1523_v28 = vmax.f32 %v3868_v27, %v1435_v63  ;;  %v2566_v30 = vpop.f32.mrb[69].mxu0  ;;  %v2661_v36 = vpop.f32.mrb[69].mxu1 }
 0x1bc   : > { %v1895_v37 = vmax.f32 %v1870_v48, 0.0  ;;  %v1839_v3 = vmax.f32 %v1523_v28, %v1751_v47  ;;  %v3872_v48 = vmax.f32 %v3634_v31, %v3636_v34 }
 0x1bd   : > { %v1440_v4 = vpop.f32.mrb[70].mxu0  ;;  %v1756_v60 = vpop.f32.mrb[70].mxu1 }
 0x1be   : > { %1920 = vst [vmem:[%s3725_s15 + $0x40] sm:$0xff] %v1895_v37  ;;  %v1871_v38 = vadd.f32 %v3716_v55, %v1839_v3  ;;  %v1524_v53 = vmax.f32 %v3869_v52, %v1440_v4  ;;  %v2569_v1 = vpop.f32.mrb[71].mxu0  ;;  %v2664_v32 = vpop.f32.mrb[71].mxu1  ;;  %v3873_v4 = vmax.f32 %v3640_v44, %v3642_v46 }
 0x1c0   : > { %v1896_v33 = vmax.f32 %v1871_v38, 0.0  ;;  %v1840_v8 = vmax.f32 %v1524_v53, %v1756_v60 }
 0x1c1   : > { %v1445_v9 = vpop.f32.mrb[72].mxu0  ;;  %v1761_v42 = vpop.f32.mrb[72].mxu1 }
 0x1c2   : > { %1921 = vst [vmem:[%s3725_s15 + $0x48] sm:$0xff] %v1896_v33  ;;  %v1872_v39 = vadd.f32 %v3716_v55, %v1840_v8  ;;  %v1525_v43 = vmax.f32 %v3870_v41, %v1445_v9  ;;  %v2572_v57 = vpop.f32.mrb[73].mxu0  ;;  %v2667_v58 = vpop.f32.mrb[73].mxu1  ;;  %v3874_v33 = vmax.f32 %v3646_v56, %v3648_v59 }
 0x1c3   : > { %v3875_v57 = vmax.f32 %v3652_v5, %v3654_v7 }
 0x1c4   : > { %v1897_v50 = vmax.f32 %v1872_v39, 0.0  ;;  %v1841_v13 = vmax.f32 %v1525_v43, %v1761_v42 }
 0x1c5   : > { %v1450_v14 = vpop.f32.mrb[74].mxu0  ;;  %v1766_v11 = vpop.f32.mrb[74].mxu1 }
 0x1c6   : > { %1922 = vst [vmem:[%s3725_s15 + $0x50] sm:$0xff] %v1897_v50  ;;  %v1873_v15 = vadd.f32 %v3716_v55, %v1841_v13  ;;  %v1526_v51 = vmax.f32 %v3871_v0, %v1450_v14  ;;  %v2575_v45 = vpop.f32.mrb[75].mxu0  ;;  %v2670_v49 = vpop.f32.mrb[75].mxu1  ;;  %v3876_v0 = vmax.f32 %v3658_v17, %v3660_v20 }
 0x1c8   : > { %v1898_v62 = vmax.f32 %v1873_v15, 0.0  ;;  %v1842_v18 = vmax.f32 %v1526_v51, %v1766_v11 }
 0x1c9   : > { %v1455_v19 = vpop.f32.mrb[76].mxu0  ;;  %v1771_v63 = vpop.f32.mrb[76].mxu1 }
 0x1ca   : > { %1923 = vst [vmem:[%s3725_s15 + $0x58] sm:$0xff] %v1898_v62  ;;  %v1874_v47 = vadd.f32 %v3716_v55, %v1842_v18  ;;  %v1527_v27 = vmax.f32 %v3872_v48, %v1455_v19  ;;  %v2578_v28 = vpop.f32.mrb[77].mxu0  ;;  %v2673_v30 = vpop.f32.mrb[77].mxu1 }
 0x1cc   : > { %v1899_v36 = vmax.f32 %v1874_v47, 0.0  ;;  %v1843_v23 = vmax.f32 %v1527_v27, %v1771_v63  ;;  %v3877_v63 = vmax.f32 %v3664_v35, %v3666_v40 }
 0x1cd   : > { %v1460_v24 = vpop.f32.mrb[78].mxu0  ;;  %v1776_v37 = vpop.f32.mrb[78].mxu1 }
 0x1ce   : > { %1924 = vst [vmem:[%s3725_s15 + $0x60] sm:$0xff] %v1899_v36  ;;  %v1875_v3 = vadd.f32 %v3716_v55, %v1843_v23  ;;  %v1528_v60 = vmax.f32 %v3873_v4, %v1460_v24  ;;  %v2581_v38 = vpop.f32.mrb[79].mxu0  ;;  %v2676_v52 = vpop.f32.mrb[79].mxu1  ;;  %v3878_v23 = vmax.f32 %v3670_v2, %v3672_v10 }
 0x1cf   : > { %v3879_v52 = vmax.f32 %v3676_v25, %v3678_v29 }
 0x1d0   : > { %v1900_v53 = vmax.f32 %v1875_v3, 0.0  ;;  %v1844_v31 = vmax.f32 %v1528_v60, %v1776_v37 }
 0x1d1   : > { %v1465_v34 = vpop.f32.mrb[80].mxu0  ;;  %v1781_v1 = vpop.f32.mrb[80].mxu1 }
 0x1d2   : > { %1925 = vst [vmem:[%s3725_s15 + $0x68] sm:$0xff] %v1900_v53  ;;  %v1876_v32 = vadd.f32 %v3716_v55, %v1844_v31  ;;  %v1529_v8 = vmax.f32 %v3874_v33, %v1465_v34  ;;  %v2584_v9 = vpop.f32.mrb[81].mxu0  ;;  %v2679_v42 = vpop.f32.mrb[81].mxu1 }
 0x1d4   : > { %v1901_v39 = vmax.f32 %v1876_v32, 0.0  ;;  %v1845_v44 = vmax.f32 %v1529_v8, %v1781_v1  ;;  %v3880_v8 = vmax.f32 %v3682_v61, %v3684_v54 }
 0x1d5   : > { %v1470_v46 = vpop.f32.mrb[82].mxu0  ;;  %v1786_v41 = vpop.f32.mrb[82].mxu1 }
 0x1d6   : > { %1926 = vst [vmem:[%s3725_s15 + $0x70] sm:$0xff] %v1901_v39  ;;  %v1877_v43 = vadd.f32 %v3716_v55, %v1845_v44  ;;  %v1530_v58 = vmax.f32 %v3875_v57, %v1470_v46  ;;  %v2587_v50 = vpop.f32.mrb[83].mxu0  ;;  %v2682_v13 = vpop.f32.mrb[83].mxu1 }
 0x1d8   : > { %v1902_v14 = vmax.f32 %v1877_v43, 0.0  ;;  %v1846_v56 = vmax.f32 %v1530_v58, %v1786_v41  ;;  %v3881_v43 = vmax.f32 %v3688_v12, %v3690_v26 }
 0x1d9   : > { %v1475_v59 = vpop.f32.mrb[84].mxu0  ;;  %v1791_v11 = vpop.f32.mrb[84].mxu1 }
 0x1da   : > { %1927 = vst [vmem:[%s3725_s15 + $0x78] sm:$0xff] %v1902_v14  ;;  %v1878_v15 = vadd.f32 %v3716_v55, %v1846_v56  ;;  %v1531_v51 = vmax.f32 %v3876_v0, %v1475_v59  ;;  %v2590_v45 = vpop.f32.mrb[85].mxu0  ;;  %v2685_v49 = vpop.f32.mrb[85].mxu1  ;;  %v3882_v59 = vmax.f32 %v3694_v21, %v3696_v16 }
 0x1dc   : > { %v1903_v62 = vmax.f32 %v1878_v15, 0.0  ;;  %v1847_v5 = vmax.f32 %v1531_v51, %v1791_v11 }
 0x1dd   : > { %v1480_v7 = vpop.f32.mrb[86].mxu0  ;;  %v1796_v18 = vpop.f32.mrb[86].mxu1 }
 0x1de   : > { %1928 = vst [vmem:[%s3725_s15 + $0x80] sm:$0xff] %v1903_v62  ;;  %v1879_v19 = vadd.f32 %v3716_v55, %v1847_v5  ;;  %v1532_v47 = vmax.f32 %v3877_v63, %v1480_v7  ;;  %v2593_v48 = vpop.f32.mrb[87].mxu0  ;;  %v2688_v27 = vpop.f32.mrb[87].mxu1  ;;  %v3883_v62 = vmax.f32 %v3702_v22, %v3704_v6 }
 0x1e0   : > { %v1904_v28 = vmax.f32 %v1879_v19, 0.0  ;;  %v1848_v17 = vmax.f32 %v1532_v47, %v1796_v18 }
 0x1e1   : > { %v1485_v20 = vpop.f32.mrb[88].mxu0  ;;  %v1801_v30 = vpop.f32.mrb[88].mxu1 }
 0x1e2   : > { %1929 = vst [vmem:[%s3725_s15 + $0x88] sm:$0xff] %v1904_v28  ;;  %v1880_v36 = vadd.f32 %v3716_v55, %v1848_v17  ;;  %v1533_v24 = vmax.f32 %v3878_v23, %v1485_v20  ;;  %v2596_v37 = vpop.f32.mrb[89].mxu0  ;;  %v2691_v3 = vpop.f32.mrb[89].mxu1 }
 0x1e4   : > { %v1905_v4 = vmax.f32 %v1880_v36, 0.0  ;;  %v1849_v35 = vmax.f32 %v1533_v24, %v1801_v30 }
 0x1e5   : > { %v1490_v40 = vpop.f32.mrb[90].mxu0  ;;  %v1806_v60 = vpop.f32.mrb[90].mxu1 }
 0x1e6   : > { %1930 = vst [vmem:[%s3725_s15 + $0x90] sm:$0xff] %v1905_v4  ;;  %v1881_v38 = vadd.f32 %v3716_v55, %v1849_v35  ;;  %v1534_v53 = vmax.f32 %v3879_v52, %v1490_v40  ;;  %v2599_v31 = vpop.f32.mrb[91].mxu0  ;;  %v2694_v34 = vpop.f32.mrb[91].mxu1 }
 0x1e8   : > { %v1906_v1 = vmax.f32 %v1881_v38, 0.0  ;;  %v1850_v2 = vmax.f32 %v1534_v53, %v1806_v60 }
 0x1e9   : > { %v1495_v10 = vpop.f32.mrb[92].mxu0  ;;  %v1811_v32 = vpop.f32.mrb[92].mxu1 }
 0x1ea   : > { %1931 = vst [vmem:[%s3725_s15 + $0x98] sm:$0xff] %v1906_v1  ;;  %v1882_v33 = vadd.f32 %v3716_v55, %v1850_v2  ;;  %v1535_v9 = vmax.f32 %v3880_v8, %v1495_v10  ;;  %v2602_v42 = vpop.f32.mrb[93].mxu0  ;;  %v2697_v39 = vpop.f32.mrb[93].mxu1 }
 0x1ec   : > { %v1907_v44 = vmax.f32 %v1882_v33, 0.0  ;;  %v1851_v25 = vmax.f32 %v1535_v9, %v1811_v32 }
 0x1ed   : > { %v1500_v29 = vpop.f32.mrb[94].mxu0  ;;  %v1816_v46 = vpop.f32.mrb[94].mxu1 }
 0x1ee   : > { %1932 = vst [vmem:[%s3725_s15 + $0xa0] sm:$0xff] %v1907_v44  ;;  %v1883_v41 = vadd.f32 %v3716_v55, %v1851_v25  ;;  %v1536_v57 = vmax.f32 %v3881_v43, %v1500_v29  ;;  %v2605_v58 = vpop.f32.mrb[95].mxu0  ;;  %v2700_v50 = vpop.f32.mrb[95].mxu1 }
 0x1f0   : > { %v1908_v13 = vmax.f32 %v1883_v41, 0.0  ;;  %v1852_v54 = vmax.f32 %v1536_v57, %v1816_v46 }
 0x1f1   : > { %v1505_v61 = vpop.f32.mrb[96].mxu0  ;;  %v1821_v14 = vpop.f32.mrb[96].mxu1 }
 0x1f2   : > { %1933 = vst [vmem:[%s3725_s15 + $0xa8] sm:$0xff] %v1908_v13  ;;  %v1884_v56 = vadd.f32 %v3716_v55, %v1852_v54  ;;  %v1537_v11 = vmax.f32 %v3882_v59, %v1505_v61  ;;  %v2608_v15 = vpop.f32.mrb[97].mxu0  ;;  %v2703_v0 = vpop.f32.mrb[97].mxu1 }
 0x1f4   : > { %v1909_v26 = vmax.f32 %v1884_v56, 0.0  ;;  %v1853_v12 = vmax.f32 %v1537_v11, %v1821_v14 }
 0x1f5   : > { %v1510_v51 = vpop.f32.mrb[98].mxu0  ;;  %v1826_v45 = vpop.f32.mrb[98].mxu1 }
 0x1f6   : > { %1934 = vst [vmem:[%s3725_s15 + $0xb0] sm:$0xff] %v1909_v26  ;;  %v1885_v49 = vadd.f32 %v3716_v55, %v1853_v12  ;;  %v1538_v5 = vmax.f32 %v3883_v62, %v1510_v51  ;;  %v2611_v7 = vpop.f32.mrb[99].mxu0  ;;  %v2706_v18 = vpop.f32.mrb[99].mxu1 }
 0x1f8   : > { %v1910_v19 = vmax.f32 %v1885_v49, 0.0  ;;  %v1854_v63 = vmax.f32 %v1538_v5, %v1826_v45 }
 0x1fa   : > { %1935 = vst [vmem:[%s3725_s15 + $0xb8] sm:$0xff] %v1910_v19  ;;  %v1886_v16 = vadd.f32 %v3716_v55, %v1854_v63 }
 0x1fc   : > { %v1911_v21 = vmax.f32 %v1886_v16, 0.0 }
 0x1fe   : > { %1936 = vst [vmem:[%s3725_s15 + $0xc0] sm:$0xf] %v1911_v21 }
 0x1ff PF: > { %p10_p9 = scmp.ge.s32.totalorder %s2868_s16, 4   ;;  %s3884_s12 = smov %s2821_s13 }
 0x200   : > { %s3885_s13 = smov %s2877_s19  ;;  %s3886_s14 = smov %s2868_s16 }
 0x201   :  { %12 = sbr.rel (!%p10_p9) target bundleno = 2 (0x2), region = 108 }

// kernel: classify_forward.4
= control target key start
LH: loop header
LB: loop body
LE: loop exit
PB: predicated region body
PF: predicated region fallthrough
CT: control target
= control target key end

     0   :  { %s1032_s12 = smov 0   ;;  %s1034_s13 = smov 0   ;;  %s1368_s0 = inlined_call_operand.vmem [shape: f32[4,2,25,150], index: 0, kind: input, shape index: {}]   ;;  %s1369_s1 = inlined_call_operand.vmem [shape: f32[150,128], index: 1, kind: input, shape index: {}]   ;;  %s1370_s2 = inlined_call_operand.vmem [shape: f32[1,128], index: 2, kind: input, shape index: {}]   ;;  %s1371_s3 = inlined_call_operand.vmem [shape: f32[2,25,128], index: 3, kind: output, shape index: {}]  }
   0x1   :  { %s1036_s14 = smov 0  }
   0x2 LB: > { %s792_s15 = sadd.s32 4294967295, %s1008_s14   ;;  %s1049_s16 = sadd.s32 1, %s1008_s14   ;;  %s1008_s14 = sphi %s1036_s14, %s1374_s14   ;;  %s1004_s13 = sphi %s1034_s13, %s1373_s13   ;;  %s1000_s12 = sphi %s1032_s12, %s1372_s12  }
   0x3   : > { %s17_s17 = ssub.s32 %s1008_s14, %s1049_s16  ;;  %s20_s18 = sadd.s32 1, %s1004_s13 }
   0x4   : > { %p18_p0 = scmp.eq.s32.totalorder %s17_s17, 0  ;;  %p27_p1 = scmp.ne.s32.totalorder %s1004_s13, %s1000_s12 }
   0x5   : > { %p28_p2 = scmp.eq.s32.totalorder %s1008_s14, 0  ;;  %p795_p4 = scmp.ge.s32.totalorder %s1008_s14, 2 }
   0x6   : > { %s1058_s19 = scalar_select %p18_p0, %s1004_s13, %s20_s18  }
   0x7   : > { %p29_p3 = por %p28_p2, %p27_p1  ;;  %127 = sbr.rel (%p795_p4) target bundleno = 34 (0x22), region = 24 }
   0xe   : > { %130 = sbr.rel (!%p29_p3) target bundleno = 34 (0x22), region = 28  ;;  %s132_s20 = sand.u32 (%p29_p3), 1, %s1004_s13  }
   0xf   : > { %s850_s21 = sshll.u32 (%p29_p3), %s1008_s14, 6  ;;  %s796_s22 = sshll.u32 (%p29_p3), %s132_s20, 8 }
  0x10   : > { %s1066_s25 = scalar_lea.vmem (%p29_p3), %s1368_s0, %s850_s21  ;;  %s1071_s26 = scalar_lea.vmem (%p29_p3), [#allocation2], %s796_s22 }
  0x11   : > { %v150_v0 = vld [vmem:[%s1066_s25] sm:$0xff] (%p29_p3)  ;;  %v152_v1 = vld [vmem:[%s1066_s25 + $0x8] sm:$0xff] (%p29_p3)  ;;  %v154_v2 = vld [vmem:[%s1066_s25 + $0x10] sm:$0xff] (%p29_p3) }
  0x12   : > { %151 = vst [vmem:[%s1071_s26] sm:$0xff] (%p29_p3), %v150_v0  ;;  %153 = vst [vmem:[%s1071_s26 + $0x8] sm:$0xff] (%p29_p3), %v152_v1  ;;  %v156_v3 = vld [vmem:[%s1066_s25 + $0x18] sm:$0xff] (%p29_p3)  ;;  %v158_v4 = vld [vmem:[%s1066_s25 + $0x20] sm:$0xff] (%p29_p3) }
  0x13   : > { %155 = vst [vmem:[%s1071_s26 + $0x10] sm:$0xff] (%p29_p3), %v154_v2  ;;  %v160_v5 = vld [vmem:[%s1066_s25 + $0x28] sm:$0xff] (%p29_p3)  ;;  %157 = vst [vmem:[%s1071_s26 + $0x18] sm:$0xff] (%p29_p3), %v156_v3  ;;  %v162_v6 = vld [vmem:[%s1066_s25 + $0x30] sm:$0xff] (%p29_p3) }
  0x14   : > { %159 = vst [vmem:[%s1071_s26 + $0x20] sm:$0xff] (%p29_p3), %v158_v4  ;;  %161 = vst [vmem:[%s1071_s26 + $0x28] sm:$0xff] (%p29_p3), %v160_v5  ;;  %v164_v7 = vld [vmem:[%s1066_s25 + $0x38] sm:$0xff] (%p29_p3)  ;;  %v166_v8 = vld [vmem:[%s1066_s25 + $0x80] sm:$0xff] (%p29_p3) }
  0x15   : > { %163 = vst [vmem:[%s1071_s26 + $0x30] sm:$0xff] %v162_v6  ;;  %165 = vst [vmem:[%s1071_s26 + $0x38] sm:$0xff] %v164_v7  ;;  %v168_v9 = vld [vmem:[%s1066_s25 + $0x88] sm:$0xff]  ;;  %v170_v10 = vld [vmem:[%s1066_s25 + $0x90] sm:$0xff] }
  0x16   : > { %167 = vst [vmem:[%s1071_s26 + $0x40] sm:$0xff] %v166_v8  ;;  %v172_v11 = vld [vmem:[%s1066_s25 + $0x98] sm:$0xff]  ;;  %169 = vst [vmem:[%s1071_s26 + $0x48] sm:$0xff] %v168_v9  ;;  %v174_v12 = vld [vmem:[%s1066_s25 + $0xa0] sm:$0xff] }
  0x17   : > { %171 = vst [vmem:[%s1071_s26 + $0x50] sm:$0xff] %v170_v10  ;;  %173 = vst [vmem:[%s1071_s26 + $0x58] sm:$0xff] %v172_v11  ;;  %v176_v13 = vld [vmem:[%s1066_s25 + $0xa8] sm:$0xff]  ;;  %v178_v14 = vld [vmem:[%s1066_s25 + $0xb0] sm:$0xff] }
  0x18   : > { %175 = vst [vmem:[%s1071_s26 + $0x60] sm:$0xff] %v174_v12  ;;  %177 = vst [vmem:[%s1071_s26 + $0x68] sm:$0xff] %v176_v13  ;;  %v180_v15 = vld [vmem:[%s1066_s25 + $0xb8] sm:$0xff]  ;;  %v182_v16 = vld [vmem:[%s1066_s25 + $0x100] sm:$0xff] }
  0x19   : > { %179 = vst [vmem:[%s1071_s26 + $0x70] sm:$0xff] %v178_v14  ;;  %v184_v17 = vld [vmem:[%s1066_s25 + $0x108] sm:$0xff]  ;;  %181 = vst [vmem:[%s1071_s26 + $0x78] sm:$0xff] %v180_v15  ;;  %v186_v18 = vld [vmem:[%s1066_s25 + $0x110] sm:$0xff] }
  0x1a   : > { %183 = vst [vmem:[%s1071_s26 + $0x80] sm:$0xff] %v182_v16  ;;  %185 = vst [vmem:[%s1071_s26 + $0x88] sm:$0xff] %v184_v17  ;;  %v188_v19 = vld [vmem:[%s1066_s25 + $0x118] sm:$0xff]  ;;  %v190_v20 = vld [vmem:[%s1066_s25 + $0x120] sm:$0xff] }
  0x1b   : > { %187 = vst [vmem:[%s1071_s26 + $0x90] sm:$0xff] %v186_v18  ;;  %189 = vst [vmem:[%s1071_s26 + $0x98] sm:$0xff] %v188_v19  ;;  %v192_v21 = vld [vmem:[%s1066_s25 + $0x128] sm:$0xff]  ;;  %v194_v22 = vld [vmem:[%s1066_s25 + $0x130] sm:$0xff] }
  0x1c   : > { %191 = vst [vmem:[%s1071_s26 + $0xa0] sm:$0xff] %v190_v20  ;;  %v196_v23 = vld [vmem:[%s1066_s25 + $0x138] sm:$0xff]  ;;  %193 = vst [vmem:[%s1071_s26 + $0xa8] sm:$0xff] %v192_v21  ;;  %v198_v24 = vld [vmem:[%s1066_s25 + $0x180] sm:$0xff] }
  0x1d   : > { %195 = vst [vmem:[%s1071_s26 + $0xb0] sm:$0xff] %v194_v22  ;;  %197 = vst [vmem:[%s1071_s26 + $0xb8] sm:$0xff] %v196_v23  ;;  %v200_v25 = vld [vmem:[%s1066_s25 + $0x188] sm:$0xff]  ;;  %v202_v26 = vld [vmem:[%s1066_s25 + $0x190] sm:$0xff] }
  0x1e   : > { %199 = vst [vmem:[%s1071_s26 + $0xc0] sm:$0xff] %v198_v24  ;;  %201 = vst [vmem:[%s1071_s26 + $0xc8] sm:$0xff] %v200_v25  ;;  %v204_v27 = vld [vmem:[%s1066_s25 + $0x198] sm:$0xff]  ;;  %v206_v28 = vld [vmem:[%s1066_s25 + $0x1a0] sm:$0xff] }
  0x1f   : > { %203 = vst [vmem:[%s1071_s26 + $0xd0] sm:$0xff] %v202_v26  ;;  %v208_v29 = vld [vmem:[%s1066_s25 + $0x1a8] sm:$0xff]  ;;  %205 = vst [vmem:[%s1071_s26 + $0xd8] sm:$0xff] %v204_v27  ;;  %v210_v30 = vld [vmem:[%s1066_s25 + $0x1b0] sm:$0xff] }
  0x20   : > { %207 = vst [vmem:[%s1071_s26 + $0xe0] sm:$0xff] %v206_v28  ;;  %209 = vst [vmem:[%s1071_s26 + $0xe8] sm:$0xff] %v208_v29  ;;  %v212_v31 = vld [vmem:[%s1066_s25 + $0x1b8] sm:$0xff] }
  0x21   : > { %211 = vst [vmem:[%s1071_s26 + $0xf0] sm:$0xff] %v210_v30  ;;  %213 = vst [vmem:[%s1071_s26 + $0xf8] sm:$0xff] %v212_v31 }
  0x22 PF: > { %p799_p5 = scmp.ge.s32.totalorder %s1008_s14, 1  ;;  %p218_p6 = scmp.lt.s32.totalorder %s1008_s14, 3 }
  0x24   : > { %p219_p7 = pnand %p799_p5, %p218_p6 }
  0x25   : > { %v253_v32 = vld [vmem:[%s1369_s1] sm:$0xff] (!%p219_p7)  ;;  %v254_v33 = vld [vmem:[%s1369_s1 + $0x8] sm:$0xff] (!%p219_p7)  ;;  %v255_v34 = vld [vmem:[%s1369_s1 + $0x10] sm:$0xff] (!%p219_p7)  ;;  %v1010_v35 = vmov (!%p219_p7), 0.0|0.0   ;;  %s225_s8 = sand.u32 (!%p219_p7), 1, %s1000_s12   ;;  %vm280_vm0 = vcmask (!%p219_p7), 179200  }
  0x26   : > { %222 = sbr.rel (%p219_p7) target bundleno = 348 (0x15c), region = 51  ;;  %852 = vmatprep.subr.bf16.mxu0 (!%p219_p7), %v1010_v35  ;;  %v1146_v36 = vpack.c.bf16 (!%p219_p7), %v254_v33, %v253_v32  ;;  %879 = vmatprep.subr.bf16.mxu1 (!%p219_p7), %v1010_v35  ;;  %v256_v37 = vld [vmem:[%s1369_s1 + $0x18] sm:$0xff] (!%p219_p7)  ;;  %s800_s9 = sshll.u32 (!%p219_p7), %s225_s8, 8  ;;  %v257_v39 = vld [vmem:[%s1369_s1 + $0x20] sm:$0xff] (!%p219_p7)  ;;  %v258_v40 = vld [vmem:[%s1369_s1 + $0x28] sm:$0xff] (!%p219_p7)  ;;  %v1011_v62 = vmov (!%p219_p7), 0.0  }
  0x27   : > { %v1155_v38 = vpack.c.bf16 (!%p219_p7), %v256_v37, %v255_v34  ;;  %s1165_s12 = scalar_lea.vmem (!%p219_p7), [#allocation2], %s800_s9  ;;  %v1170_v42 = vpack.c.bf16 (!%p219_p7), %v258_v40, %v257_v39  ;;  %v259_v44 = vld [vmem:[%s1369_s1 + $0x30] sm:$0xff] (!%p219_p7)  ;;  %v260_v45 = vld [vmem:[%s1369_s1 + $0x38] sm:$0xff] (!%p219_p7)  ;;  %v261_v47 = vld [vmem:[%s1369_s1 + $0x40] sm:$0xff] (!%p219_p7)  ;;  %vm293_vm1 = vcmask (!%p219_p7), 1045504   ;;  %p248_p8 = scmp.lt.s32.totalorder (!%p219_p7), %s792_s15, 1 }
  0x28   : > { %854 = vmatpush1.bf16.msra.mxu0 (!%p219_p7), %v1146_v36  ;;  %881 = vmatpush1.bf16.msra.mxu1 (!%p219_p7), %v1146_v36  ;;  %v273_v41 = vld [vmem:[%s1165_s12 + $0x8] sm:$0xff] (!%p219_p7)  ;;  %v1185_v46 = vpack.c.bf16 (!%p219_p7), %v260_v45, %v259_v44  ;;  %v263_v50 = vld [vmem:[%s1369_s1 + $0x50] sm:$0xff] (!%p219_p7)  ;;  %v264_v51 = vld [vmem:[%s1369_s1 + $0x58] sm:$0xff] (!%p219_p7) }
  0x29   : > { %855 = vmatprep.subr.bf16.mxu0 (!%p219_p7), %v1010_v35  ;;  %882 = vmatprep.subr.bf16.mxu1 (!%p219_p7), %v1010_v35  ;;  %v809_v43 = vld [vmem:[%s1165_s12 + $0x48] sm:$0xff] (!%p219_p7)  ;;  %v1209_v52 = vpack.c.bf16 (!%p219_p7), %v264_v51, %v263_v50  ;;  %v265_v53 = vld [vmem:[%s1369_s1 + $0x60] sm:$0xff] (!%p219_p7)  ;;  %v267_v56 = vld [vmem:[%s1369_s1 + $0x70] sm:$0xff] (!%p219_p7) }
  0x2a   : > { %804 = vmatprep.mubr.msk.f32.mxu0 (!%p219_p7), %vm280_vm0, %v273_v41  ;;  %817 = vmatprep.mubr.msk.f32.mxu1 (!%p219_p7), %vm280_vm0, %v809_v43  ;;  %v262_v48 = vld [vmem:[%s1369_s1 + $0x48] sm:$0xff] (!%p219_p7)  ;;  %v268_v57 = vld [vmem:[%s1369_s1 + $0x78] sm:$0xff] (!%p219_p7)  ;;  %v269_v59 = vld [vmem:[%s1369_s1 + $0x80] sm:$0xff] (!%p219_p7) }
  0x2b   : > { %v1197_v49 = vpack.c.bf16 (!%p219_p7), %v262_v48, %v261_v47  ;;  %v266_v54 = vld [vmem:[%s1369_s1 + $0x68] sm:$0xff] (!%p219_p7)  ;;  %v1233_v58 = vpack.c.bf16 (!%p219_p7), %v268_v57, %v267_v56  ;;  %v1255_v63 = vld [vmem:[%s1369_s1 + $0x90] sm:$0x3f] (!%p219_p7)  ;;  %v272_v0 = vld [vmem:[%s1165_s12] sm:$0xff] (!%p219_p7) }
  0x2c   : > { %857 = vmatpush1.bf16.msra.mxu0 (!%p219_p7), %v1155_v38  ;;  %884 = vmatpush1.bf16.msra.mxu1 (!%p219_p7), %v1155_v38  ;;  %v1221_v55 = vpack.c.bf16 (!%p219_p7), %v266_v54, %v265_v53  ;;  %v270_v60 = vld [vmem:[%s1369_s1 + $0x88] sm:$0xff] (!%p219_p7)  ;;  %v808_v1 = vld [vmem:[%s1165_s12 + $0x40] sm:$0xff] (!%p219_p7)  ;;  %v275_v2 = vld [vmem:[%s1165_s12 + $0x18] sm:$0xff] (!%p219_p7) }
  0x2d   : > { %858 = vmatprep.subr.bf16.mxu0 %v1010_v35  ;;  %885 = vmatprep.subr.bf16.mxu1 %v1010_v35  ;;  %v1245_v61 = vpack.c.bf16 %v270_v60, %v269_v59  ;;  %v274_v3 = vld [vmem:[%s1165_s12 + $0x10] sm:$0xff]  ;;  %v811_v4 = vld [vmem:[%s1165_s12 + $0x58] sm:$0xff]  ;;  %v277_v6 = vld [vmem:[%s1165_s12 + $0x28] sm:$0xff]  ;;  %s1376_s15 = smov (!%p248_p8, %s792_s15), 1 }
  0x2e   : > { %v810_v5 = vld [vmem:[%s1165_s12 + $0x50] sm:$0xff]  ;;  %v276_v7 = vld [vmem:[%s1165_s12 + $0x20] sm:$0xff]  ;;  %v813_v8 = vld [vmem:[%s1165_s12 + $0x68] sm:$0xff]  ;;  %s851_s26 = sshll.u32 %s1376_s15, 5 }
  0x2f   : > { %v812_v9 = vld [vmem:[%s1165_s12 + $0x60] sm:$0xff]  ;;  %v279_v10 = vld [vmem:[%s1165_s12 + $0x38] sm:$0x1]  ;;  %v278_v11 = vld [vmem:[%s1165_s12 + $0x30] sm:$0x1]  ;;  %s252_s14 = scalar_lea.vmem %s1371_s3, %s851_s26 }
  0x30   : > { %860 = vmatpush1.bf16.msra.mxu0 %v1170_v42  ;;  %887 = vmatpush1.bf16.msra.mxu1 %v1170_v42  ;;  %v815_v12 = vld [vmem:[%s1165_s12 + $0x78] sm:$0x1]  ;;  %v814_v13 = vld [vmem:[%s1165_s12 + $0x70] sm:$0x1]  ;;  %v822_v14 = vld [vmem:[%s1165_s12 + $0x88] sm:$0xff] }
  0x31   : > { %861 = vmatprep.subr.bf16.mxu0 %v1010_v35  ;;  %888 = vmatprep.subr.bf16.mxu1 %v1010_v35  ;;  %v835_v15 = vld [vmem:[%s1165_s12 + $0xc8] sm:$0xff]  ;;  %v821_v16 = vld [vmem:[%s1165_s12 + $0x80] sm:$0xff]  ;;  %v824_v17 = vld [vmem:[%s1165_s12 + $0x98] sm:$0xff] }
  0x32   : > { %v834_v18 = vld [vmem:[%s1165_s12 + $0xc0] sm:$0xff]  ;;  %v837_v19 = vld [vmem:[%s1165_s12 + $0xd8] sm:$0xff]  ;;  %v823_v20 = vld [vmem:[%s1165_s12 + $0x90] sm:$0xff] }
  0x33   : > { %v826_v21 = vld [vmem:[%s1165_s12 + $0xa8] sm:$0xff]  ;;  %v836_v22 = vld [vmem:[%s1165_s12 + $0xd0] sm:$0xff]  ;;  %v825_v24 = vld [vmem:[%s1165_s12 + $0xa0] sm:$0xff] }
  0x34   : > { %863 = vmatpush1.bf16.msra.mxu0 %v1185_v46  ;;  %890 = vmatpush1.bf16.msra.mxu1 %v1185_v46  ;;  %v839_v23 = vld [vmem:[%s1165_s12 + $0xe8] sm:$0xff]  ;;  %v828_v25 = vld [vmem:[%s1165_s12 + $0xb8] sm:$0x1]  ;;  %v838_v26 = vld [vmem:[%s1165_s12 + $0xe0] sm:$0xff] }
  0x35   : > { %864 = vmatprep.subr.bf16.mxu0 %v1010_v35  ;;  %891 = vmatprep.subr.bf16.mxu1 %v1010_v35  ;;  %v841_v27 = vld [vmem:[%s1165_s12 + $0xf8] sm:$0x1]  ;;  %v827_v28 = vld [vmem:[%s1165_s12 + $0xb0] sm:$0x1]  ;;  %v847_v54 = vld [vmem:[%s1370_s2] ss:$0 sm:$0xff] }
  0x36   : > { %v840_v29 = vld [vmem:[%s1165_s12 + $0xf0] sm:$0x1] }
  0x38   : > { %866 = vmatpush1.bf16.msra.mxu0 %v1197_v49  ;;  %893 = vmatpush1.bf16.msra.mxu1 %v1197_v49 }
  0x39   : > { %867 = vmatprep.subr.bf16.mxu0 %v1010_v35  ;;  %894 = vmatprep.subr.bf16.mxu1 %v1010_v35 }
  0x3c   : > { %869 = vmatpush1.bf16.msra.mxu0 %v1209_v52  ;;  %896 = vmatpush1.bf16.msra.mxu1 %v1209_v52 }
  0x3d   : > { %870 = vmatprep.subr.bf16.mxu0 %v1010_v35  ;;  %897 = vmatprep.subr.bf16.mxu1 %v1010_v35 }
  0x40   : > { %872 = vmatpush1.bf16.msra.mxu0 %v1221_v55  ;;  %899 = vmatpush1.bf16.msra.mxu1 %v1221_v55 }
  0x41   : > { %873 = vmatprep.subr.bf16.mxu0 %v1010_v35  ;;  %900 = vmatprep.subr.bf16.mxu1 %v1010_v35 }
  0x44   : > { %875 = vmatpush1.bf16.msra.mxu0 %v1233_v58  ;;  %902 = vmatpush1.bf16.msra.mxu1 %v1233_v58 }
  0x45   : > { %876 = vmatprep.subr.bf16.mxu0 %v1010_v35  ;;  %903 = vmatprep.subr.bf16.mxu1 %v1010_v35 }
  0x48   : > { %878 = vmatpush1.bf16.msra.mxu0 %v1245_v61  ;;  %905 = vmatpush1.bf16.msra.mxu1 %v1245_v61 }
  0x49   : > { %333 = vmatprep.subr.mxu0 %v1011_v62  ;;  %439 = vmatprep.subr.mxu1 %v1011_v62 }
  0x4c   : > { %803 = vmatpush1.msk.msra.mxu0 %vm293_vm1, %v1255_v63  ;;  %816 = vmatpush1.msk.msra.mxu1 %vm293_vm1, %v1255_v63 }
  0x4d   : > { %362 = vmatmul.mubr.f32.vlgmr.msra.gmra.mrb[0].mxu0 %v272_v0  ;;  %906 = vmatprep.subr.bf16.mxu0 %v1010_v35 }
  0x4e   : > { %468 = vmatmul.mubr.f32.vlgmr.msra.gmra.mrb[0].mxu1 %v808_v1  ;;  %908 = vmatpush1.bf16.msra.mxu0 %v1146_v36 }
  0x4f   : > { %933 = vmatprep.subr.bf16.mxu1 %v1010_v35  ;;  %909 = vmatprep.subr.bf16.mxu0 %v1010_v35 }
  0x50   : > { %935 = vmatpush1.bf16.msra.mxu1 %v1146_v36  ;;  %805 = vmatprep.mubr.msk.f32.mxu0 %vm280_vm0, %v275_v2 }
  0x51   : > { %936 = vmatprep.subr.bf16.mxu1 %v1010_v35  ;;  %367 = vmatmul.mubr.f32.gmra.mrb[2].mxu0 %v274_v3 }
  0x52   : > { %911 = vmatpush1.bf16.msra.mxu0 %v1155_v38  ;;  %818 = vmatprep.mubr.msk.f32.mxu1 %vm280_vm0, %v811_v4 }
  0x53   : > { %912 = vmatprep.subr.bf16.mxu0 %v1010_v35  ;;  %473 = vmatmul.mubr.f32.gmra.mrb[2].mxu1 %v810_v5 }
  0x54   : > { %938 = vmatpush1.bf16.msra.mxu1 %v1155_v38  ;;  %806 = vmatprep.mubr.msk.f32.mxu0 %vm280_vm0, %v277_v6 }
  0x55   : > { %939 = vmatprep.subr.bf16.mxu1 %v1010_v35  ;;  %372 = vmatmul.mubr.f32.gmra.mrb[4].mxu0 %v276_v7 }
  0x56   : > { %914 = vmatpush1.bf16.msra.mxu0 %v1170_v42  ;;  %819 = vmatprep.mubr.msk.f32.mxu1 %vm280_vm0, %v813_v8 }
  0x57   : > { %915 = vmatprep.subr.bf16.mxu0 %v1010_v35  ;;  %478 = vmatmul.mubr.f32.gmra.mrb[4].mxu1 %v812_v9 }
  0x58   : > { %941 = vmatpush1.bf16.msra.mxu1 %v1170_v42  ;;  %807 = vmatprep.mubr.msk.f32.mxu0 %vm280_vm0, %v279_v10 }
  0x59   : > { %942 = vmatprep.subr.bf16.mxu1 %v1010_v35  ;;  %377 = vmatmul.mubr.f32.gmra.mrb[6].mxu0 %v278_v11 }
  0x5a   : > { %917 = vmatpush1.bf16.msra.mxu0 %v1185_v46  ;;  %820 = vmatprep.mubr.msk.f32.mxu1 %vm280_vm0, %v815_v12 }
  0x5b   : > { %918 = vmatprep.subr.bf16.mxu0 %v1010_v35  ;;  %483 = vmatmul.mubr.f32.gmra.mrb[6].mxu1 %v814_v13 }
  0x5c   : > { %944 = vmatpush1.bf16.msra.mxu1 %v1185_v46  ;;  %830 = vmatprep.mubr.msk.f32.mxu0 %vm280_vm0, %v822_v14 }
  0x5d   : > { %945 = vmatprep.subr.bf16.mxu1 %v1010_v35  ;;  %843 = vmatprep.mubr.msk.f32.mxu1 %vm280_vm0, %v835_v15 }
  0x5e   : > { %920 = vmatpush1.bf16.msra.mxu0 %v1197_v49 }
  0x5f   : > { %921 = vmatprep.subr.bf16.mxu0 %v1010_v35 }
  0x60   : > { %947 = vmatpush1.bf16.msra.mxu1 %v1197_v49 }
  0x61   : > { %948 = vmatprep.subr.bf16.mxu1 %v1010_v35 }
  0x62   : > { %923 = vmatpush1.bf16.msra.mxu0 %v1209_v52 }
  0x63   : > { %924 = vmatprep.subr.bf16.mxu0 %v1010_v35 }
  0x64   : > { %950 = vmatpush1.bf16.msra.mxu1 %v1209_v52 }
  0x65   : > { %951 = vmatprep.subr.bf16.mxu1 %v1010_v35 }
  0x66   : > { %926 = vmatpush1.bf16.msra.mxu0 %v1221_v55 }
  0x67   : > { %927 = vmatprep.subr.bf16.mxu0 %v1010_v35 }
  0x68   : > { %953 = vmatpush1.bf16.msra.mxu1 %v1221_v55 }
  0x69   : > { %954 = vmatprep.subr.bf16.mxu1 %v1010_v35 }
  0x6a   : > { %929 = vmatpush1.bf16.msra.mxu0 %v1233_v58 }
  0x6b   : > { %930 = vmatprep.subr.bf16.mxu0 %v1010_v35 }
  0x6c   : > { %956 = vmatpush1.bf16.msra.mxu1 %v1233_v58 }
  0x6d   : > { %957 = vmatprep.subr.bf16.mxu1 %v1010_v35 }
  0x6e   : > { %932 = vmatpush1.bf16.msra.mxu0 %v1245_v61 }
  0x6f   : > { %549 = vmatprep.subr.mxu0 %v1011_v62 }
  0x70   : > { %959 = vmatpush1.bf16.msra.mxu1 %v1245_v61 }
  0x71   : > { %659 = vmatprep.subr.mxu1 %v1011_v62 }
  0x72   : > { %829 = vmatpush1.msk.msra.mxu0 %vm293_vm1, %v1255_v63 }
  0x73   : > { %578 = vmatmul.mubr.f32.vlgmr.msra.gmra.mrb[8].mxu0 %v821_v16 }
  0x74   : > { %842 = vmatpush1.msk.msra.mxu1 %vm293_vm1, %v1255_v63  ;;  %831 = vmatprep.mubr.msk.f32.mxu0 %vm280_vm0, %v824_v17 }
  0x75   : > { %688 = vmatmul.mubr.f32.vlgmr.msra.gmra.mrb[8].mxu1 %v834_v18 }
  0x76   : > { %844 = vmatprep.mubr.msk.f32.mxu1 %vm280_vm0, %v837_v19 }
  0x77   : > { %583 = vmatmul.mubr.f32.gmra.mrb[10].mxu0 %v823_v20 }
  0x78   : > { %832 = vmatprep.mubr.msk.f32.mxu0 %vm280_vm0, %v826_v21 }
  0x79   : > { %693 = vmatmul.mubr.f32.gmra.mrb[10].mxu1 %v836_v22 }
  0x7a   : > { %845 = vmatprep.mubr.msk.f32.mxu1 %vm280_vm0, %v839_v23 }
  0x7b   : > { %588 = vmatmul.mubr.f32.gmra.mrb[12].mxu0 %v825_v24 }
  0x7c   : > { %833 = vmatprep.mubr.msk.f32.mxu0 %vm280_vm0, %v828_v25 }
  0x7d   : > { %698 = vmatmul.mubr.f32.gmra.mrb[12].mxu1 %v838_v26 }
  0x7e   : > { %846 = vmatprep.mubr.msk.f32.mxu1 %vm280_vm0, %v841_v27 }
  0x7f   : > { %593 = vmatmul.mubr.f32.gmra.mrb[14].mxu0 %v827_v28 }
  0x81   : > { %703 = vmatmul.mubr.f32.gmra.mrb[14].mxu1 %v840_v29 }
 0x120   : > { %v363_v30 = vpop.f32.mrb[0].mxu0 }
 0x121   : > { %v365_v31 = vpop.f32.mrb[1].mxu0  ;;  %v469_v32 = vpop.f32.mrb[0].mxu1 }
 0x122   : > { %v488_v33 = vmax.f32 %v363_v30, %v469_v32  ;;  %v471_v34 = vpop.f32.mrb[1].mxu1 }
 0x124   : > { %v368_v35 = vpop.f32.mrb[2].mxu0 }
 0x125   : > { %v370_v36 = vpop.f32.mrb[3].mxu0 }
 0x126   : > { %v474_v37 = vpop.f32.mrb[2].mxu1 }
 0x127   : > { %v489_v38 = vmax.f32 %v368_v35, %v474_v37  ;;  %v476_v39 = vpop.f32.mrb[3].mxu1 }
 0x128   : > { %v373_v40 = vpop.f32.mrb[4].mxu0 }
 0x129   : > { %v375_v41 = vpop.f32.mrb[5].mxu0 }
 0x12a   : > { %v479_v42 = vpop.f32.mrb[4].mxu1 }
 0x12b   : > { %v490_v43 = vmax.f32 %v373_v40, %v479_v42  ;;  %v481_v44 = vpop.f32.mrb[5].mxu1 }
 0x12c   : > { %v378_v45 = vpop.f32.mrb[6].mxu0 }
 0x12d   : > { %v380_v46 = vpop.f32.mrb[7].mxu0 }
 0x12e   : > { %v484_v47 = vpop.f32.mrb[6].mxu1 }
 0x12f   : > { %v491_v48 = vmax.f32 %v378_v45, %v484_v47  ;;  %v486_v49 = vpop.f32.mrb[7].mxu1 }
 0x146   : > { %v579_v50 = vpop.f32.mrb[8].mxu0 }
 0x147   : > { %v598_v51 = vmax.f32 %v488_v33, %v579_v50  ;;  %v581_v52 = vpop.f32.mrb[9].mxu0 }
 0x148   : > { %v689_v53 = vpop.f32.mrb[8].mxu1 }
 0x149   : > { %v708_v55 = vmax.f32 %v598_v51, %v689_v53  ;;  %v691_v56 = vpop.f32.mrb[9].mxu1 }
 0x14a   : > { %v584_v57 = vpop.f32.mrb[10].mxu0 }
 0x14b   : > { %v719_v58 = vadd.f32 %v847_v54, %v708_v55  ;;  %v599_v59 = vmax.f32 %v489_v38, %v584_v57  ;;  %v586_v60 = vpop.f32.mrb[11].mxu0 }
 0x14c   : > { %v694_v61 = vpop.f32.mrb[10].mxu1 }
 0x14d   : > { %v723_v62 = vmax.f32 %v719_v58, 0.0  ;;  %v709_v63 = vmax.f32 %v599_v59, %v694_v61  ;;  %v696_v0 = vpop.f32.mrb[11].mxu1 }
 0x14e   : > { %v589_v1 = vpop.f32.mrb[12].mxu0 }
 0x14f   : > { %727 = vst [vmem:[%s252_s14] sm:$0xff] %v723_v62  ;;  %v720_v2 = vadd.f32 %v847_v54, %v709_v63  ;;  %v600_v3 = vmax.f32 %v490_v43, %v589_v1  ;;  %v591_v4 = vpop.f32.mrb[13].mxu0 }
 0x150   : > { %v699_v5 = vpop.f32.mrb[12].mxu1 }
 0x151   : > { %v724_v6 = vmax.f32 %v720_v2, 0.0  ;;  %v710_v7 = vmax.f32 %v600_v3, %v699_v5  ;;  %v701_v8 = vpop.f32.mrb[13].mxu1 }
 0x152   : > { %v594_v9 = vpop.f32.mrb[14].mxu0 }
 0x153   : > { %728 = vst [vmem:[%s252_s14 + $0x8] sm:$0xff] %v724_v6  ;;  %v721_v10 = vadd.f32 %v847_v54, %v710_v7  ;;  %v601_v11 = vmax.f32 %v491_v48, %v594_v9  ;;  %v596_v12 = vpop.f32.mrb[15].mxu0 }
 0x154   : > { %v704_v13 = vpop.f32.mrb[14].mxu1 }
 0x155   : > { %v725_v14 = vmax.f32 %v721_v10, 0.0  ;;  %v711_v15 = vmax.f32 %v601_v11, %v704_v13  ;;  %v706_v16 = vpop.f32.mrb[15].mxu1 }
 0x157   : > { %729 = vst [vmem:[%s252_s14 + $0x10] sm:$0xff] %v725_v14  ;;  %v722_v17 = vadd.f32 %v847_v54, %v711_v15 }
 0x159   : > { %v726_v18 = vmax.f32 %v722_v17, 0.0 }
 0x15b   : > { %730 = vst [vmem:[%s252_s14 + $0x18] sm:$0x1] %v726_v18 }
 0x15c PF: > { %p10_p9 = scmp.ge.s32.totalorder %s1049_s16, 4   ;;  %s1372_s12 = smov %s1004_s13 }
 0x15d   : > { %s1373_s13 = smov %s1058_s19  ;;  %s1374_s14 = smov %s1049_s16 }
 0x15e   :  { %12 = sbr.rel (!%p10_p9) target bundleno = 2 (0x2), region = 93 }

// kernel: classify_forward.5
= control target key start
LH: loop header
LB: loop body
LE: loop exit
PB: predicated region body
PF: predicated region fallthrough
CT: control target
= control target key end

     0   :  { %v732_v4 = vmov 0.0|0.0   ;;  %v733_v26 = vmov 1983009808   ;;  %v90_v28 = vlaneseq  ;;  %vm106_vm0 = vcmask 130048   ;;  %s1072_s0 = inlined_call_operand.vmem [shape: f32[2,400], index: 0, kind: input, shape index: {}]   ;;  %s1073_s1 = inlined_call_operand.vmem [shape: f32[400,128], index: 1, kind: input, shape index: {}]   ;;  %s1074_s2 = inlined_call_operand.vmem [shape: f32[1,128], index: 2, kind: input, shape index: {}]   ;;  %s1075_s3 = inlined_call_operand.vmem [shape: f32[128,128], index: 3, kind: input, shape index: {}]   ;;  %s1076_s4 = inlined_call_operand.vmem [shape: f32[1,128], index: 4, kind: input, shape index: {}]   ;;  %s1077_s5 = inlined_call_operand.vmem [shape: f32[128,128], index: 5, kind: input, shape index: {}]   ;;  %s1078_s6 = inlined_call_operand.vmem [shape: f32[1,128], index: 6, kind: input, shape index: {}]   ;;  %s1079_s7 = inlined_call_operand.hbm [shape: f32[2,128], index: 7, kind: output, shape index: {}]  }
   0x1   :  { %v44_v0 = vld [vmem:[%s1073_s1 + $0x80] sm:$0xff]  ;;  %v45_v1 = vld [vmem:[%s1073_s1 + $0x88] sm:$0xff]  ;;  %627 = vmatprep.subr.bf16.mxu1 %v732_v4  ;;  %v46_v10 = vld [vmem:[%s1073_s1 + $0x90] sm:$0xff]  ;;  %v88_v27 = vunpack.c.l.s4 %v733_v26 }
   0x2   :  { %v28_v2 = vld [vmem:[%s1073_s1] sm:$0xff]  ;;  %v595_v3 = vpack.c.bf16 %v45_v1, %v44_v0  ;;  %v29_v5 = vld [vmem:[%s1073_s1 + $0x8] sm:$0xff]  ;;  %v47_v11 = vld [vmem:[%s1073_s1 + $0x98] sm:$0xff]  ;;  %v91_v39 = vshrl.u32 %v90_v28, 7 }
   0x3   :  { %v60_v6 = vld [vmem:[%s1073_s1 + $0x100] sm:$0xff]  ;;  %v61_v7 = vld [vmem:[%s1073_s1 + $0x108] sm:$0xff]  ;;  %v597_v8 = vpack.c.bf16 %v29_v5, %v28_v2  ;;  %v30_v12 = vld [vmem:[%s1073_s1 + $0x10] sm:$0xff]  ;;  %v599_v13 = vpack.c.bf16 %v47_v11, %v46_v10  ;;  %v89_v38 = vunpack.c.0.s8 %v88_v27 }
   0x4   :  { %v628_v9 = vpack.c.bf16 %v61_v7, %v60_v6  ;;  %596 = vmatprep.subr.bf16.mxu0 %v595_v3  ;;  %v31_v14 = vld [vmem:[%s1073_s1 + $0x18] sm:$0xff]  ;;  %v62_v15 = vld [vmem:[%s1073_s1 + $0x110] sm:$0xff]  ;;  %v48_v19 = vld [vmem:[%s1073_s1 + $0xa0] sm:$0xff] }
   0x5   :  { %v63_v16 = vld [vmem:[%s1073_s1 + $0x118] sm:$0xff]  ;;  %598 = vmatpush3.bf16.msra.mxu0 %v597_v8  ;;  %v601_v17 = vpack.c.bf16 %v31_v14, %v30_v12  ;;  %v49_v20 = vld [vmem:[%s1073_s1 + $0xa8] sm:$0xff]  ;;  %v32_v21 = vld [vmem:[%s1073_s1 + $0x20] sm:$0xff]  ;;  %v92_v49 = vsub.s32 %v89_v38, %v91_v39 }
   0x6   :  { %629 = vmatpush1.bf16.msra.mxu1 %v628_v9  ;;  %v631_v18 = vpack.c.bf16 %v63_v16, %v62_v15  ;;  %600 = vmatprep.subr.bf16.mxu0 %v599_v13  ;;  %v603_v22 = vpack.c.bf16 %v49_v20, %v48_v19  ;;  %v33_v23 = vld [vmem:[%s1073_s1 + $0x28] sm:$0xff]  ;;  %v64_v24 = vld [vmem:[%s1073_s1 + $0x120] sm:$0xff]  ;;  %v50_v29 = vld [vmem:[%s1073_s1 + $0xb0] sm:$0xff] }
   0x7   :  { %630 = vmatprep.subr.bf16.mxu1 %v732_v4  ;;  %v65_v25 = vld [vmem:[%s1073_s1 + $0x128] sm:$0xff]  ;;  %v51_v30 = vld [vmem:[%s1073_s1 + $0xb8] sm:$0xff]  ;;  %v605_v31 = vpack.c.bf16 %v33_v23, %v32_v21  ;;  %v34_v33 = vld [vmem:[%s1073_s1 + $0x30] sm:$0xff] }
   0x8   :  { %v634_v32 = vpack.c.bf16 %v65_v25, %v64_v24  ;;  %v607_v34 = vpack.c.bf16 %v51_v30, %v50_v29  ;;  %v35_v35 = vld [vmem:[%s1073_s1 + $0x38] sm:$0xff]  ;;  %v66_v36 = vld [vmem:[%s1073_s1 + $0x130] sm:$0xff]  ;;  %v52_v40 = vld [vmem:[%s1073_s1 + $0xc0] sm:$0xff] }
   0x9   :  { %602 = vmatpush3.bf16.msra.mxu0 %v601_v17  ;;  %v67_v37 = vld [vmem:[%s1073_s1 + $0x138] sm:$0xff]  ;;  %v53_v41 = vld [vmem:[%s1073_s1 + $0xc8] sm:$0xff]  ;;  %v609_v42 = vpack.c.bf16 %v35_v35, %v34_v33  ;;  %v36_v44 = vld [vmem:[%s1073_s1 + $0x40] sm:$0xff] }
   0xa   :  { %632 = vmatpush1.bf16.msra.mxu1 %v631_v18  ;;  %604 = vmatprep.subr.bf16.mxu0 %v603_v22  ;;  %v637_v43 = vpack.c.bf16 %v67_v37, %v66_v36  ;;  %v611_v45 = vpack.c.bf16 %v53_v41, %v52_v40  ;;  %v37_v46 = vld [vmem:[%s1073_s1 + $0x48] sm:$0xff]  ;;  %v68_v47 = vld [vmem:[%s1073_s1 + $0x140] sm:$0xff]  ;;  %v54_v50 = vld [vmem:[%s1073_s1 + $0xd0] sm:$0xff] }
   0xb   :  { %633 = vmatprep.subr.bf16.mxu1 %v732_v4  ;;  %v69_v48 = vld [vmem:[%s1073_s1 + $0x148] sm:$0xff]  ;;  %v55_v51 = vld [vmem:[%s1073_s1 + $0xd8] sm:$0xff]  ;;  %v613_v52 = vpack.c.bf16 %v37_v46, %v36_v44  ;;  %v38_v54 = vld [vmem:[%s1073_s1 + $0x50] sm:$0xff] }
   0xc   :  { %v640_v53 = vpack.c.bf16 %v69_v48, %v68_v47  ;;  %v27_v55 = vld [vmem:[%s1072_s0] sm:$0xff]  ;;  %v615_v56 = vpack.c.bf16 %v55_v51, %v54_v50  ;;  %v39_v57 = vld [vmem:[%s1073_s1 + $0x58] sm:$0xff]  ;;  %v70_v58 = vld [vmem:[%s1073_s1 + $0x150] sm:$0xff] }
   0xd   :  { %606 = vmatpush3.bf16.msra.mxu0 %v605_v31  ;;  %v71_v59 = vld [vmem:[%s1073_s1 + $0x158] sm:$0xff]  ;;  %v86_v60 = vcombine.high %v27_v55, %v27_v55  ;;  %v93_v61 = vrot.slane %v27_v55, %v92_v49  ;;  %v56_v62 = vld [vmem:[%s1073_s1 + $0xe0] sm:$0xff]  ;;  %v57_v63 = vld [vmem:[%s1073_s1 + $0xe8] sm:$0xff]  ;;  %v617_v2 = vpack.c.bf16 %v39_v57, %v38_v54 }
   0xe   :  { %635 = vmatpush1.bf16.msra.mxu1 %v634_v32  ;;  %608 = vmatprep.subr.bf16.mxu0 %v607_v34  ;;  %v643_v3 = vpack.c.bf16 %v71_v59, %v70_v58  ;;  %v40_v5 = vld [vmem:[%s1073_s1 + $0x60] sm:$0xff]  ;;  %v41_v6 = vld [vmem:[%s1073_s1 + $0x68] sm:$0xff]  ;;  %v619_v7 = vpack.c.bf16 %v57_v63, %v56_v62 }
   0xf   :  { %636 = vmatprep.subr.bf16.mxu1 %v732_v4  ;;  %v101_v0 = vcombine.high %v93_v61, %v93_v61  ;;  %v100_v1 = vrot.slane %v86_v60, %v92_v49  ;;  %v72_v8 = vld [vmem:[%s1073_s1 + $0x160] sm:$0xff]  ;;  %v73_v9 = vld [vmem:[%s1073_s1 + $0x168] sm:$0xff] }
  0x11   :  { %610 = vmatpush3.bf16.msra.mxu0 %v609_v42  ;;  %v102_v10 = vcombine.high %v100_v1, %v100_v1 }
  0x12   :  { %638 = vmatpush1.bf16.msra.mxu1 %v637_v43  ;;  %612 = vmatprep.subr.bf16.mxu0 %v611_v45 }
  0x13   :  { %639 = vmatprep.subr.bf16.mxu1 %v732_v4 }
  0x15   :  { %614 = vmatpush3.bf16.msra.mxu0 %v613_v52 }
  0x16   :  { %641 = vmatpush1.bf16.msra.mxu1 %v640_v53  ;;  %616 = vmatprep.subr.bf16.mxu0 %v615_v56 }
  0x17   :  { %642 = vmatprep.subr.bf16.mxu1 %v732_v4 }
  0x18   :  { %12 = vsyncpa [#allocation3], 0  ;;  %v58_v11 = vld [vmem:[%s1073_s1 + $0xf0] sm:$0xff]  ;;  %v59_v12 = vld [vmem:[%s1073_s1 + $0xf8] sm:$0xff]  ;;  %173 = vmatprep.mubr.f32.mxu0 %v101_v0  ;;  %453 = vmatprep.mubr.msk.f32.mxu1 %vm106_vm0, %v102_v10  ;;  %v621_v13 = vpack.c.bf16 %v41_v6, %v40_v5  ;;  %v646_v14 = vpack.c.bf16 %v73_v9, %v72_v8  ;;  %vm734_vm1 = vmmov 0   ;;  %v735_v49 = vmov 0.0  }
  0x19   :  { %618 = vmatpush3.bf16.msra.mxu0 %v617_v2  ;;  %v42_v15 = vld [vmem:[%s1073_s1 + $0x70] sm:$0xff]  ;;  %v623_v16 = vpack.c.bf16 %v59_v12, %v58_v11  ;;  %v43_v17 = vld [vmem:[%s1073_s1 + $0x78] sm:$0xff]  ;;  %v76_v22 = vld [vmem:[%s1073_s1 + $0x180] sm:$0xff]  ;;  %s736_s25 = smov [#allocation2]  }
  0x1a   :  { %644 = vmatpush1.bf16.msra.mxu1 %v643_v3  ;;  %620 = vmatprep.subr.bf16.mxu0 %v619_v7  ;;  %v74_v18 = vld [vmem:[%s1073_s1 + $0x170] sm:$0xff]  ;;  %v75_v19 = vld [vmem:[%s1073_s1 + $0x178] sm:$0xff]  ;;  %v625_v20 = vpack.c.bf16 %v43_v17, %v42_v15  ;;  %v77_v23 = vld [vmem:[%s1073_s1 + $0x188] sm:$0xff]  ;;  %s444_s26 = sshll.u32 %s736_s25, 4  ;;  %s445_s26 = int_to_ptr.vmem [resolvable:$true] %s444_s26 }
  0x1b   :  { %645 = vmatprep.subr.bf16.mxu1 %v732_v4  ;;  %v649_v21 = vpack.c.bf16 %v75_v19, %v74_v18  ;;  %v250_v24 = vld [vmem:[%s1075_s3] sm:$0xff]  ;;  %v251_v25 = vld [vmem:[%s1075_s3 + $0x8] sm:$0xff]  ;;  %v652_v26 = vpack.c.bf16 %v77_v23, %v76_v22  ;;  %v252_v28 = vld [vmem:[%s1075_s3 + $0x10] sm:$0xff]  ;;  %p713_p1 = scmp.lt.s32.totalorder %s445_s26, %s445_s26 }
  0x1c   :  { %v655_v27 = vpack.c.bf16 %v251_v25, %v250_v24  ;;  %v253_v29 = vld [vmem:[%s1075_s3 + $0x18] sm:$0xff]  ;;  %v254_v31 = vld [vmem:[%s1075_s3 + $0x20] sm:$0xff]  ;;  %v255_v32 = vld [vmem:[%s1075_s3 + $0x28] sm:$0xff] }
  0x1d   :  { %622 = vmatpush3.bf16.msra.mxu0 %v621_v13  ;;  %v658_v30 = vpack.c.bf16 %v253_v29, %v252_v28  ;;  %v661_v33 = vpack.c.bf16 %v255_v32, %v254_v31  ;;  %v256_v34 = vld [vmem:[%s1075_s3 + $0x30] sm:$0xff]  ;;  %v257_v35 = vld [vmem:[%s1075_s3 + $0x38] sm:$0xff]  ;;  %v258_v37 = vld [vmem:[%s1075_s3 + $0x40] sm:$0xff] }
  0x1e   :  { %647 = vmatpush1.bf16.msra.mxu1 %v646_v14  ;;  %624 = vmatprep.subr.bf16.mxu0 %v623_v16  ;;  %v664_v36 = vpack.c.bf16 %v257_v35, %v256_v34  ;;  %v259_v38 = vld [vmem:[%s1075_s3 + $0x48] sm:$0xff]  ;;  %v260_v40 = vld [vmem:[%s1075_s3 + $0x50] sm:$0xff]  ;;  %v261_v41 = vld [vmem:[%s1075_s3 + $0x58] sm:$0xff] }
  0x1f   :  { %648 = vmatprep.subr.bf16.mxu1 %v732_v4  ;;  %v667_v39 = vpack.c.bf16 %v259_v38, %v258_v37  ;;  %v670_v42 = vpack.c.bf16 %v261_v41, %v260_v40  ;;  %v262_v43 = vld [vmem:[%s1075_s3 + $0x60] sm:$0xff]  ;;  %v263_v44 = vld [vmem:[%s1075_s3 + $0x68] sm:$0xff]  ;;  %v264_v46 = vld [vmem:[%s1075_s3 + $0x70] sm:$0xff] }
  0x20   :  { %v673_v45 = vpack.c.bf16 %v263_v44, %v262_v43  ;;  %v265_v47 = vld [vmem:[%s1075_s3 + $0x78] sm:$0xff]  ;;  %v344_v50 = vld [vmem:[%s1077_s5] sm:$0xff]  ;;  %v345_v51 = vld [vmem:[%s1077_s5 + $0x8] sm:$0xff] }
  0x21   :  { %626 = vmatpush3.bf16.msra.mxu0 %v625_v20  ;;  %v676_v48 = vpack.c.bf16 %v265_v47, %v264_v46  ;;  %v346_v52 = vld [vmem:[%s1077_s5 + $0x10] sm:$0xff]  ;;  %v679_v53 = vpack.c.bf16 %v345_v51, %v344_v50  ;;  %v347_v54 = vld [vmem:[%s1077_s5 + $0x18] sm:$0xff]  ;;  %v348_v56 = vld [vmem:[%s1077_s5 + $0x20] sm:$0xff] }
  0x22   :  { %650 = vmatpush1.bf16.msra.mxu1 %v649_v21  ;;  %654 = vmatprep.subr.bf16.mxu0 %v732_v4  ;;  %v682_v55 = vpack.c.bf16 %v347_v54, %v346_v52  ;;  %v349_v57 = vld [vmem:[%s1077_s5 + $0x28] sm:$0xff]  ;;  %v350_v59 = vld [vmem:[%s1077_s5 + $0x30] sm:$0xff]  ;;  %v351_v60 = vld [vmem:[%s1077_s5 + $0x38] sm:$0xff] }
  0x23   :  { %651 = vmatprep.subr.bf16.mxu1 %v732_v4  ;;  %v685_v58 = vpack.c.bf16 %v349_v57, %v348_v56  ;;  %v352_v62 = vld [vmem:[%s1077_s5 + $0x40] sm:$0xff]  ;;  %v353_v63 = vld [vmem:[%s1077_s5 + $0x48] sm:$0xff]  ;;  %v355_v2 = vld [vmem:[%s1077_s5 + $0x58] sm:$0xff] }
  0x24   :  { %174 = vmatmul.mubr.f32.vlgmr.msra.gmra.mrb[0].mxu0 %v93_v61  ;;  %v688_v61 = vpack.c.bf16 %v351_v60, %v350_v59  ;;  %v691_v0 = vpack.c.bf16 %v353_v63, %v352_v62  ;;  %v356_v5 = vld [vmem:[%s1077_s5 + $0x60] sm:$0xff]  ;;  %v357_v6 = vld [vmem:[%s1077_s5 + $0x68] sm:$0xff]  ;;  %v358_v17 = vld [vmem:[%s1077_s5 + $0x70] sm:$0xff] }
  0x25   :  { %656 = vmatpush3.bf16.msra.mxu0 %v655_v27  ;;  %557 = vmatprep.mubr.msk.f32.mxu0 %vm734_vm1, %v735_v49  ;;  %v697_v7 = vpack.c.bf16 %v357_v6, %v356_v5  ;;  %v452_v10 = vld [vmem:[%s1074_s2] ss:$0 sm:$0xff] }
  0x26   :  { %653 = vmatpush1.bf16.msra.mxu1 %v652_v26  ;;  %657 = vmatprep.subr.bf16.mxu0 %v732_v4  ;;  %v454_v19 = vld [vmem:[%s1076_s4] ss:$0 sm:$0xff] }
  0x27   :  { %678 = vmatprep.subr.bf16.mxu1 %v732_v4  ;;  %v455_v24 = vld [vmem:[%s1078_s6] ss:$0 sm:$0xff] }
  0x29   :  { %244 = vmatmul.mubr.f32.vlgmr.msra.gmra.mrb[0].mxu1 %v100_v1  ;;  %659 = vmatpush3.bf16.msra.mxu0 %v658_v30  ;;  %v354_v1 = vld [vmem:[%s1077_s5 + $0x50] sm:$0xff] }
  0x2a   :  { %660 = vmatprep.subr.bf16.mxu0 %v732_v4  ;;  %592 = vmatprep.mubr.msk.f32.mxu1 %vm734_vm1, %v735_v49  ;;  %v694_v3 = vpack.c.bf16 %v355_v2, %v354_v1 }
  0x2b   :  { %680 = vmatpush3.bf16.msra.mxu1 %v679_v53 }
  0x2c   :  { %681 = vmatprep.subr.bf16.mxu1 %v732_v4 }
  0x2d   :  { %662 = vmatpush3.bf16.msra.mxu0 %v661_v33 }
  0x2e   :  { %663 = vmatprep.subr.bf16.mxu0 %v732_v4 }
  0x2f   :  { %683 = vmatpush3.bf16.msra.mxu1 %v682_v55 }
  0x30   :  { %684 = vmatprep.subr.bf16.mxu1 %v732_v4 }
  0x31   :  { %665 = vmatpush3.bf16.msra.mxu0 %v664_v36 }
  0x32   :  { %666 = vmatprep.subr.bf16.mxu0 %v732_v4 }
  0x33   :  { %686 = vmatpush3.bf16.msra.mxu1 %v685_v58 }
  0x34   :  { %687 = vmatprep.subr.bf16.mxu1 %v732_v4 }
  0x35   :  { %668 = vmatpush3.bf16.msra.mxu0 %v667_v39 }
  0x36   :  { %669 = vmatprep.subr.bf16.mxu0 %v732_v4 }
  0x37   :  { %689 = vmatpush3.bf16.msra.mxu1 %v688_v61 }
  0x38   :  { %690 = vmatprep.subr.bf16.mxu1 %v732_v4 }
  0x39   :  { %671 = vmatpush3.bf16.msra.mxu0 %v670_v42 }
  0x3a   :  { %672 = vmatprep.subr.bf16.mxu0 %v732_v4 }
  0x3b   :  { %692 = vmatpush3.bf16.msra.mxu1 %v691_v0 }
  0x3c   :  { %693 = vmatprep.subr.bf16.mxu1 %v732_v4 }
  0x3d   :  { %674 = vmatpush3.bf16.msra.mxu0 %v673_v45 }
  0x3e   :  { %675 = vmatprep.subr.bf16.mxu0 %v732_v4 }
  0x3f   :  { %695 = vmatpush3.bf16.msra.mxu1 %v694_v3 }
  0x40   :  { %696 = vmatprep.subr.bf16.mxu1 %v732_v4 }
  0x41   :  { %677 = vmatpush3.bf16.msra.mxu0 %v676_v48 }
  0x43   :  { %698 = vmatpush3.bf16.msra.mxu1 %v697_v7 }
  0x44   :  { %699 = vmatprep.subr.bf16.mxu1 %v732_v4  ;;  %v359_v4 = vld [vmem:[%s1077_s5 + $0x78] sm:$0xff]  ;;  %s708_s5 = scalar_lea.vmem %s445_s26, 32 }
  0x45   :  { %v700_v18 = vpack.c.bf16 %v359_v4, %v358_v17  ;;  %p709_p0 = scmp.ne.s32.totalorder %s445_s26, %s708_s5  ;;  %p714_p2 = scmp.lt.s32.totalorder %s708_s5, %s708_s5 }
  0x47   :  { %701 = vmatpush3.bf16.msra.mxu1 %v700_v18  ;;  %p715_p3 = por %p714_p2, %p713_p1 }
  0x49   :  { %p716_p4 = pnand %p715_p3, %p709_p0 }
  0xf7   :  { %v488_v8 = vpop.f32.mrb[0].mxu0 }
  0xf8   :  { %v489_v9 = vpop.f32.mrb[1].mxu0 }
  0xf9   :  { %v490_v11 = vadd.f32 %v489_v9, %v488_v8 }
  0xfb   :  { %v176_v12 = vadd.f32 %v490_v11, %v452_v10 }
  0xfc   :  { %v245_v13 = vpop.f32.mrb[0].mxu1 }
  0xfd   :  { %v247_v14 = vpop.f32.mrb[1].mxu1  ;;  %v246_v15 = vadd.f32 %v245_v13, %v176_v12 }
  0xff   :  { %v249_v16 = vmax.f32 %v246_v15, 0.0 }
 0x101   :  { %558 = vmatmul.mubr.f32.vlgmr.msra.gmra.mrb[2].mxu0 %v249_v16 }
 0x1d4   :  { %v339_v20 = vpop.f32.mrb[2].mxu0 }
 0x1d5   :  { %v340_v21 = vadd.f32 %v454_v19, %v339_v20  ;;  %v559_v22 = vpop.f32.mrb[3].mxu0 }
 0x1d7   :  { %v343_v23 = vmax.f32 %v340_v21, 0.0 }
 0x1d9   :  { %593 = vmatmul.mubr.f32.vlgmr.msra.gmra.mrb[2].mxu1 %v343_v23 }
 0x2ac   :  { %v433_v25 = vpop.f32.mrb[2].mxu1 }
 0x2ad   :  { %v434_v26 = vadd.f32 %v455_v24, %v433_v25  ;;  %v594_v27 = vpop.f32.mrb[3].mxu1 }
 0x2af   :  { %437 = vst [vmem:[#allocation2] sm:$0x3] %v434_v26 }
 0x2b0   :  { %719 = shalt.err (!%p716_p4)
}
 0x2b1   :  { %s720_s28 = scalar_lea.hbm %s1079_s7, 32 }
 0x2b2   :  { %p721_p5 = scmp.ne.s32.totalorder %s1079_s7, %s720_s28  ;;  %p724_p6 = scmp.lt.u32.totalorder %s720_s28, %s1079_s7 }
 0x2b4   :  { %p726_p7 = pnand %p724_p6, %p721_p5 }
 0x2b6   :  { %729 = shalt.err (!%p726_p7)
}
 0x2b7   :  { %447 = dma.vmem_to_hbm [thread:$0]  %s445_s26, 32, %s1079_s7, [#allocation3]  }
 0x2b8   :  { %730 = dma.done.wait [#allocation3], 32  }
 0x2b9   :  { %731 = vsyncadd [#allocation3], 4294967264 }
 0x2ba   :  { %451 = vsyncpa [#allocation3], 1 }

</bundles_post_ra>
